<compile_context>
chip_gen: v7x
topology: tpu7x:2x2x1
jax: 0.10.0
libtpu: 0.0.40
codegen_flags: <defaults>
</compile_context>

<pallas_src>
import functools
import math

import jax
import jax.numpy as jnp
from jax.experimental import pallas as pl
from jax.experimental.pallas import tpu as pltpu

# ---- NeuromorphicConfig defaults -------------------------------------------
SPIKE_THRESHOLD = 1.0
RESET_POTENTIAL = 0.0
MEMBRANE_TAU = 20.0
REFRACTORY_PERIOD = 2.0
TIME_STEP = 1.0
SPARSE_CONNECTIVITY = 0.2

_LANE = 128
_SUBLANE = 8


def _pad_to(n, m):
    return ((n + m - 1) // m) * m


# ---- Fused kernel: all layers + full time loop in one invocation ------------
def _make_fused_kernel(num_layers, time_steps, decay, threshold, reset_v, dt,
                       refractory):
    inv_t = 1.0 / float(time_steps)

    def kernel(enc_ref, *rest):
        w_refs = rest[:num_layers]          # per-layer (INp, OUTp) effective W
        out_ref = rest[num_layers]          # (TB, OUT_last_p) mean firing rate

        tb = enc_ref.shape[0]
        enc = enc_ref[...]                  # (TB, IN0p) rate-encoded spikes

        # Per-layer LIF state carried in vregs across the statically unrolled
        # time loop -- zero intermediate VMEM stores.
        v = [jnp.zeros((tb, w_refs[l].shape[1]), jnp.float32)
             for l in range(num_layers)]
        r = [jnp.zeros((tb, w_refs[l].shape[1]), jnp.float32)
             for l in range(num_layers)]
        rate = jnp.zeros((tb, w_refs[-1].shape[1]), jnp.float32)

        for t in range(time_steps):
            spikes = None
            for l in range(num_layers):
                if l == 0:
                    if t == 0:
                        current = jnp.dot(enc, w_refs[0][...],
                                          preferred_element_type=jnp.float32)
                    else:
                        # Input spikes are exactly zero for t > 0: skip matmul.
                        current = jnp.zeros_like(v[0])
                else:
                    current = jnp.dot(spikes, w_refs[l][...],
                                      preferred_element_type=jnp.float32)

                # LIF dynamics (matches the PyTorch update order exactly).
                vv = v[l] * decay + current
                vv = jnp.where(r[l] > 0.0, reset_v, vv)      # refractory clamp
                rr = jnp.maximum(r[l] - dt, 0.0)
                spk = (vv > threshold).astype(jnp.float32)
                fired = spk > 0.0
                v[l] = jnp.where(fired, reset_v, vv)
                r[l] = jnp.where(fired, refractory, rr)
                spikes = spk

            rate = rate + spikes                              # last-layer spikes

        out_ref[...] = rate * inv_t                           # single store

    return kernel


# ---- Parameter init + one-time effective-weight preparation -----------------
def init_snn_params(key, input_size, hidden_sizes, output_size):
    layer_sizes = [input_size] + list(hidden_sizes) + [output_size]
    params = []
    for i in range(len(layer_sizes) - 1):
        in_sz, out_sz = layer_sizes[i], layer_sizes[i + 1]
        key, kw, km = jax.random.split(key, 3)
        weight = jax.random.normal(kw, (out_sz, in_sz), jnp.float32) * 0.1
        mask = (jax.random.uniform(km, (out_sz, in_sz)) <
                SPARSE_CONNECTIVITY).astype(jnp.float32)
        params.append((weight, mask))
    return params


def prepare_effective_weights(params):
    """Apply the connectivity mask once and pad each (in, out) weight to
    128-lane-aligned tiles. Inference weights are static -> done once."""
    padded = []
    for weight, mask in params:
        w_eff_t = (weight * mask).T                     # (in, out)
        in_sz, out_sz = w_eff_t.shape
        in_p = _pad_to(in_sz, _LANE)
        out_p = _pad_to(out_sz, _LANE)
        w_pad = jnp.zeros((in_p, out_p), jnp.float32).at[:in_sz, :out_sz].set(
            w_eff_t)
        padded.append(w_pad)
    return padded


# ---- Forward pass ------------------------------------------------------------
def snn_forward(x, eff_weights_padded, *, output_size, time_steps, encode_key):
    """x: (B, input_size) in [0, 1]. Returns (B, output_size) mean firing rate."""
    B, IN = x.shape
    num_layers = len(eff_weights_padded)
    IN0p = eff_weights_padded[0].shape[0]
    OUTp = eff_weights_padded[-1].shape[1]

    # Rate coding at t == 0: (rand < x).float(); t > 0 spikes are implicit zeros.
    enc = (jax.random.uniform(encode_key, x.shape) < x).astype(jnp.float32)

    batch_tile = min(128, _pad_to(B, _SUBLANE))
    Bp = _pad_to(B, batch_tile)
    enc_padded = jnp.zeros((Bp, IN0p), jnp.float32).at[:B, :IN].set(enc)

    kernel = _make_fused_kernel(
        num_layers, time_steps,
        decay=float(math.exp(-TIME_STEP / MEMBRANE_TAU)),
        threshold=SPIKE_THRESHOLD,
        reset_v=RESET_POTENTIAL,
        dt=TIME_STEP,
        refractory=REFRACTORY_PERIOD,
    )

    in_specs = [pl.BlockSpec((batch_tile, IN0p), lambda b: (b, 0))]
    for w in eff_weights_padded:
        in_specs.append(pl.BlockSpec(w.shape, lambda b: (0, 0)))

    rate = pl.pallas_call(
        kernel,
        out_shape=jax.ShapeDtypeStruct((Bp, OUTp), jnp.float32),
        grid=(Bp // batch_tile,),                       # batch tiles only
        in_specs=in_specs,
        out_specs=pl.BlockSpec((batch_tile, OUTp), lambda b: (b, 0)),
        compiler_params=pltpu.CompilerParams(
            dimension_semantics=("parallel",)),         # megacore batch split
    )(enc_padded, *eff_weights_padded)

    return rate[:B, :output_size]                       # strip padding


if __name__ == "__main__":
    key = jax.random.PRNGKey(0)
    k_param, k_input, k_encode = jax.random.split(key, 3)

    batch, input_size, hidden_sizes, output_size = 4, 32, [64, 32], 16
    time_steps = 8

    params = init_snn_params(k_param, input_size, hidden_sizes, output_size)
    eff_w = prepare_effective_weights(params)           # once, outside hot path
    x = jax.random.uniform(k_input, (batch, input_size), jnp.float32)

    fwd = jax.jit(functools.partial(
        snn_forward, output_size=output_size, time_steps=time_steps))
    out = fwd(x, eff_w, encode_key=k_encode)
    out = jax.block_until_ready(out)

    assert out.shape == (batch, output_size)
    assert bool(jnp.all(jnp.isfinite(out)))
    assert bool(jnp.all((out >= 0.0) & (out <= 1.0)))   # rates are in [0, 1]
    print("KERNEL_OK")
</pallas_src>

<mosaic_0001>
module attributes {stable_mosaic.version = 11 : i64} {
  func.func @kernel(%arg0: i32, %arg1: memref<8x128xf32, #tpu.memory_space<vmem>>, %arg2: memref<128x128xf32, #tpu.memory_space<vmem>>, %arg3: memref<128x128xf32, #tpu.memory_space<vmem>>, %arg4: memref<128x128xf32, #tpu.memory_space<vmem>>, %arg5: memref<8x128xf32, #tpu.memory_space<vmem>>) attributes {dimension_semantics = [#tpu.dimension_semantics<parallel>], iteration_bounds = array<i64: 1>, scalar_prefetch = 0 : i64, scratch_operands = 0 : i64, tpu.core_type = #tpu.core_type<tc>, window_params = [{transform_indices = @transform_0, window_bounds = array<i64: 8, 128>}, {pipeline_mode = #tpu.pipeline_mode<synchronous>, transform_indices = @transform_1, window_bounds = array<i64: 128, 128>}, {pipeline_mode = #tpu.pipeline_mode<synchronous>, transform_indices = @transform_2, window_bounds = array<i64: 128, 128>}, {pipeline_mode = #tpu.pipeline_mode<synchronous>, transform_indices = @transform_3, window_bounds = array<i64: 128, 128>}, {transform_indices = @transform_4, window_bounds = array<i64: 8, 128>}]} {
    %c0 = arith.constant 0 : index
    %c0_0 = arith.constant 0 : index
    %0 = vector.load %arg1[%c0, %c0_0] : memref<8x128xf32, #tpu.memory_space<vmem>>, vector<8x128xf32>
    %cst = arith.constant 0.000000e+00 : f32
    %1 = vector.broadcast %cst : f32 to vector<8x128xf32>
    %cst_1 = arith.constant 0.000000e+00 : f32
    %2 = vector.broadcast %cst_1 : f32 to vector<8x128xf32>
    %cst_2 = arith.constant 0.000000e+00 : f32
    %3 = vector.broadcast %cst_2 : f32 to vector<8x128xf32>
    %cst_3 = arith.constant 0.000000e+00 : f32
    %4 = vector.broadcast %cst_3 : f32 to vector<8x128xf32>
    %cst_4 = arith.constant 0.000000e+00 : f32
    %5 = vector.broadcast %cst_4 : f32 to vector<8x128xf32>
    %cst_5 = arith.constant 0.000000e+00 : f32
    %6 = vector.broadcast %cst_5 : f32 to vector<8x128xf32>
    %cst_6 = arith.constant 0.000000e+00 : f32
    %7 = vector.broadcast %cst_6 : f32 to vector<8x128xf32>
    %c0_7 = arith.constant 0 : index
    %c0_8 = arith.constant 0 : index
    %8 = vector.load %arg2[%c0_7, %c0_8] : memref<128x128xf32, #tpu.memory_space<vmem>>, vector<128x128xf32>
    %cst_9 = arith.constant dense<0.000000e+00> : vector<8x128xf32>
    %9 = tpu.matmul %0, %8, %cst_9 {dimension_numbers = #tpu.dot_dimension_numbers<[1], [0], [0], [1], [0, 0, 1, 1], [], []>} : vector<8x128xf32>, vector<128x128xf32>, vector<8x128xf32> -> vector<8x128xf32>
    %cst_10 = arith.constant 0.951229453 : f32
    %10 = vector.broadcast %cst_10 : f32 to vector<8x128xf32>
    %11 = arith.mulf %1, %10 : vector<8x128xf32>
    %12 = arith.addf %11, %9 : vector<8x128xf32>
    %cst_11 = arith.constant 0.000000e+00 : f32
    %13 = vector.broadcast %cst_11 : f32 to vector<8x128xf32>
    %14 = arith.cmpf ogt, %4, %13 : vector<8x128xf32>
    %cst_12 = arith.constant 0.000000e+00 : f32
    %15 = vector.broadcast %cst_12 : f32 to vector<8x128xf32>
    %16 = arith.select %14, %15, %12 : vector<8x128xi1>, vector<8x128xf32>
    %cst_13 = arith.constant 1.000000e+00 : f32
    %17 = vector.broadcast %cst_13 : f32 to vector<8x128xf32>
    %18 = arith.subf %4, %17 : vector<8x128xf32>
    %cst_14 = arith.constant 0.000000e+00 : f32
    %19 = vector.broadcast %cst_14 : f32 to vector<8x128xf32>
    %20 = arith.maximumf %18, %19 : vector<8x128xf32>
    %cst_15 = arith.constant 1.000000e+00 : f32
    %21 = vector.broadcast %cst_15 : f32 to vector<8x128xf32>
    %22 = arith.cmpf ogt, %16, %21 : vector<8x128xf32>
    %23 = arith.extui %22 : vector<8x128xi1> to vector<8x128xi32>
    %24 = arith.sitofp %23 : vector<8x128xi32> to vector<8x128xf32>
    %cst_16 = arith.constant 0.000000e+00 : f32
    %25 = vector.broadcast %cst_16 : f32 to vector<8x128xf32>
    %26 = arith.cmpf ogt, %24, %25 : vector<8x128xf32>
    %cst_17 = arith.constant 0.000000e+00 : f32
    %27 = vector.broadcast %cst_17 : f32 to vector<8x128xf32>
    %28 = arith.select %26, %27, %16 : vector<8x128xi1>, vector<8x128xf32>
    %cst_18 = arith.constant 2.000000e+00 : f32
    %29 = vector.broadcast %cst_18 : f32 to vector<8x128xf32>
    %30 = arith.select %26, %29, %20 : vector<8x128xi1>, vector<8x128xf32>
    %c0_19 = arith.constant 0 : index
    %c0_20 = arith.constant 0 : index
    %31 = vector.load %arg3[%c0_19, %c0_20] : memref<128x128xf32, #tpu.memory_space<vmem>>, vector<128x128xf32>
    %cst_21 = arith.constant dense<0.000000e+00> : vector<8x128xf32>
    %32 = tpu.matmul %24, %31, %cst_21 {dimension_numbers = #tpu.dot_dimension_numbers<[1], [0], [0], [1], [0, 0, 1, 1], [], []>} : vector<8x128xf32>, vector<128x128xf32>, vector<8x128xf32> -> vector<8x128xf32>
    %cst_22 = arith.constant 0.951229453 : f32
    %33 = vector.broadcast %cst_22 : f32 to vector<8x128xf32>
    %34 = arith.mulf %2, %33 : vector<8x128xf32>
    %35 = arith.addf %34, %32 : vector<8x128xf32>
    %cst_23 = arith.constant 0.000000e+00 : f32
    %36 = vector.broadcast %cst_23 : f32 to vector<8x128xf32>
    %37 = arith.cmpf ogt, %5, %36 : vector<8x128xf32>
    %cst_24 = arith.constant 0.000000e+00 : f32
    %38 = vector.broadcast %cst_24 : f32 to vector<8x128xf32>
    %39 = arith.select %37, %38, %35 : vector<8x128xi1>, vector<8x128xf32>
    %cst_25 = arith.constant 1.000000e+00 : f32
    %40 = vector.broadcast %cst_25 : f32 to vector<8x128xf32>
    %41 = arith.subf %5, %40 : vector<8x128xf32>
    %cst_26 = arith.constant 0.000000e+00 : f32
    %42 = vector.broadcast %cst_26 : f32 to vector<8x128xf32>
    %43 = arith.maximumf %41, %42 : vector<8x128xf32>
    %cst_27 = arith.constant 1.000000e+00 : f32
    %44 = vector.broadcast %cst_27 : f32 to vector<8x128xf32>
    %45 = arith.cmpf ogt, %39, %44 : vector<8x128xf32>
    %46 = arith.extui %45 : vector<8x128xi1> to vector<8x128xi32>
    %47 = arith.sitofp %46 : vector<8x128xi32> to vector<8x128xf32>
    %cst_28 = arith.constant 0.000000e+00 : f32
    %48 = vector.broadcast %cst_28 : f32 to vector<8x128xf32>
    %49 = arith.cmpf ogt, %47, %48 : vector<8x128xf32>
    %cst_29 = arith.constant 0.000000e+00 : f32
    %50 = vector.broadcast %cst_29 : f32 to vector<8x128xf32>
    %51 = arith.select %49, %50, %39 : vector<8x128xi1>, vector<8x128xf32>
    %cst_30 = arith.constant 2.000000e+00 : f32
    %52 = vector.broadcast %cst_30 : f32 to vector<8x128xf32>
    %53 = arith.select %49, %52, %43 : vector<8x128xi1>, vector<8x128xf32>
    %c0_31 = arith.constant 0 : index
    %c0_32 = arith.constant 0 : index
    %54 = vector.load %arg4[%c0_31, %c0_32] : memref<128x128xf32, #tpu.memory_space<vmem>>, vector<128x128xf32>
    %cst_33 = arith.constant dense<0.000000e+00> : vector<8x128xf32>
    %55 = tpu.matmul %47, %54, %cst_33 {dimension_numbers = #tpu.dot_dimension_numbers<[1], [0], [0], [1], [0, 0, 1, 1], [], []>} : vector<8x128xf32>, vector<128x128xf32>, vector<8x128xf32> -> vector<8x128xf32>
    %cst_34 = arith.constant 0.951229453 : f32
    %56 = vector.broadcast %cst_34 : f32 to vector<8x128xf32>
    %57 = arith.mulf %3, %56 : vector<8x128xf32>
    %58 = arith.addf %57, %55 : vector<8x128xf32>
    %cst_35 = arith.constant 0.000000e+00 : f32
    %59 = vector.broadcast %cst_35 : f32 to vector<8x128xf32>
    %60 = arith.cmpf ogt, %6, %59 : vector<8x128xf32>
    %cst_36 = arith.constant 0.000000e+00 : f32
    %61 = vector.broadcast %cst_36 : f32 to vector<8x128xf32>
    %62 = arith.select %60, %61, %58 : vector<8x128xi1>, vector<8x128xf32>
    %cst_37 = arith.constant 1.000000e+00 : f32
    %63 = vector.broadcast %cst_37 : f32 to vector<8x128xf32>
    %64 = arith.subf %6, %63 : vector<8x128xf32>
    %cst_38 = arith.constant 0.000000e+00 : f32
    %65 = vector.broadcast %cst_38 : f32 to vector<8x128xf32>
    %66 = arith.maximumf %64, %65 : vector<8x128xf32>
    %cst_39 = arith.constant 1.000000e+00 : f32
    %67 = vector.broadcast %cst_39 : f32 to vector<8x128xf32>
    %68 = arith.cmpf ogt, %62, %67 : vector<8x128xf32>
    %69 = arith.extui %68 : vector<8x128xi1> to vector<8x128xi32>
    %70 = arith.sitofp %69 : vector<8x128xi32> to vector<8x128xf32>
    %cst_40 = arith.constant 0.000000e+00 : f32
    %71 = vector.broadcast %cst_40 : f32 to vector<8x128xf32>
    %72 = arith.cmpf ogt, %70, %71 : vector<8x128xf32>
    %cst_41 = arith.constant 0.000000e+00 : f32
    %73 = vector.broadcast %cst_41 : f32 to vector<8x128xf32>
    %74 = arith.select %72, %73, %62 : vector<8x128xi1>, vector<8x128xf32>
    %cst_42 = arith.constant 2.000000e+00 : f32
    %75 = vector.broadcast %cst_42 : f32 to vector<8x128xf32>
    %76 = arith.select %72, %75, %66 : vector<8x128xi1>, vector<8x128xf32>
    %77 = arith.addf %7, %70 : vector<8x128xf32>
    %cst_43 = arith.constant 0.000000e+00 : f32
    %78 = vector.broadcast %cst_43 : f32 to vector<8x128xf32>
    %cst_44 = arith.constant 0.951229453 : f32
    %79 = vector.broadcast %cst_44 : f32 to vector<8x128xf32>
    %80 = arith.mulf %28, %79 : vector<8x128xf32>
    %81 = arith.addf %80, %78 : vector<8x128xf32>
    %cst_45 = arith.constant 0.000000e+00 : f32
    %82 = vector.broadcast %cst_45 : f32 to vector<8x128xf32>
    %83 = arith.cmpf ogt, %30, %82 : vector<8x128xf32>
    %cst_46 = arith.constant 0.000000e+00 : f32
    %84 = vector.broadcast %cst_46 : f32 to vector<8x128xf32>
    %85 = arith.select %83, %84, %81 : vector<8x128xi1>, vector<8x128xf32>
    %cst_47 = arith.constant 1.000000e+00 : f32
    %86 = vector.broadcast %cst_47 : f32 to vector<8x128xf32>
    %87 = arith.subf %30, %86 : vector<8x128xf32>
    %cst_48 = arith.constant 0.000000e+00 : f32
    %88 = vector.broadcast %cst_48 : f32 to vector<8x128xf32>
    %89 = arith.maximumf %87, %88 : vector<8x128xf32>
    %cst_49 = arith.constant 1.000000e+00 : f32
    %90 = vector.broadcast %cst_49 : f32 to vector<8x128xf32>
    %91 = arith.cmpf ogt, %85, %90 : vector<8x128xf32>
    %92 = arith.extui %91 : vector<8x128xi1> to vector<8x128xi32>
    %93 = arith.sitofp %92 : vector<8x128xi32> to vector<8x128xf32>
    %cst_50 = arith.constant 0.000000e+00 : f32
    %94 = vector.broadcast %cst_50 : f32 to vector<8x128xf32>
    %95 = arith.cmpf ogt, %93, %94 : vector<8x128xf32>
    %cst_51 = arith.constant 0.000000e+00 : f32
    %96 = vector.broadcast %cst_51 : f32 to vector<8x128xf32>
    %97 = arith.select %95, %96, %85 : vector<8x128xi1>, vector<8x128xf32>
    %cst_52 = arith.constant 2.000000e+00 : f32
    %98 = vector.broadcast %cst_52 : f32 to vector<8x128xf32>
    %99 = arith.select %95, %98, %89 : vector<8x128xi1>, vector<8x128xf32>
    %c0_53 = arith.constant 0 : index
    %c0_54 = arith.constant 0 : index
    %100 = vector.load %arg3[%c0_53, %c0_54] : memref<128x128xf32, #tpu.memory_space<vmem>>, vector<128x128xf32>
    %cst_55 = arith.constant dense<0.000000e+00> : vector<8x128xf32>
    %101 = tpu.matmul %93, %100, %cst_55 {dimension_numbers = #tpu.dot_dimension_numbers<[1], [0], [0], [1], [0, 0, 1, 1], [], []>} : vector<8x128xf32>, vector<128x128xf32>, vector<8x128xf32> -> vector<8x128xf32>
    %cst_56 = arith.constant 0.951229453 : f32
    %102 = vector.broadcast %cst_56 : f32 to vector<8x128xf32>
    %103 = arith.mulf %51, %102 : vector<8x128xf32>
    %104 = arith.addf %103, %101 : vector<8x128xf32>
    %cst_57 = arith.constant 0.000000e+00 : f32
    %105 = vector.broadcast %cst_57 : f32 to vector<8x128xf32>
    %106 = arith.cmpf ogt, %53, %105 : vector<8x128xf32>
    %cst_58 = arith.constant 0.000000e+00 : f32
    %107 = vector.broadcast %cst_58 : f32 to vector<8x128xf32>
    %108 = arith.select %106, %107, %104 : vector<8x128xi1>, vector<8x128xf32>
    %cst_59 = arith.constant 1.000000e+00 : f32
    %109 = vector.broadcast %cst_59 : f32 to vector<8x128xf32>
    %110 = arith.subf %53, %109 : vector<8x128xf32>
    %cst_60 = arith.constant 0.000000e+00 : f32
    %111 = vector.broadcast %cst_60 : f32 to vector<8x128xf32>
    %112 = arith.maximumf %110, %111 : vector<8x128xf32>
    %cst_61 = arith.constant 1.000000e+00 : f32
    %113 = vector.broadcast %cst_61 : f32 to vector<8x128xf32>
    %114 = arith.cmpf ogt, %108, %113 : vector<8x128xf32>
    %115 = arith.extui %114 : vector<8x128xi1> to vector<8x128xi32>
    %116 = arith.sitofp %115 : vector<8x128xi32> to vector<8x128xf32>
    %cst_62 = arith.constant 0.000000e+00 : f32
    %117 = vector.broadcast %cst_62 : f32 to vector<8x128xf32>
    %118 = arith.cmpf ogt, %116, %117 : vector<8x128xf32>
    %cst_63 = arith.constant 0.000000e+00 : f32
    %119 = vector.broadcast %cst_63 : f32 to vector<8x128xf32>
    %120 = arith.select %118, %119, %108 : vector<8x128xi1>, vector<8x128xf32>
    %cst_64 = arith.constant 2.000000e+00 : f32
    %121 = vector.broadcast %cst_64 : f32 to vector<8x128xf32>
    %122 = arith.select %118, %121, %112 : vector<8x128xi1>, vector<8x128xf32>
    %c0_65 = arith.constant 0 : index
    %c0_66 = arith.constant 0 : index
    %123 = vector.load %arg4[%c0_65, %c0_66] : memref<128x128xf32, #tpu.memory_space<vmem>>, vector<128x128xf32>
    %cst_67 = arith.constant dense<0.000000e+00> : vector<8x128xf32>
    %124 = tpu.matmul %116, %123, %cst_67 {dimension_numbers = #tpu.dot_dimension_numbers<[1], [0], [0], [1], [0, 0, 1, 1], [], []>} : vector<8x128xf32>, vector<128x128xf32>, vector<8x128xf32> -> vector<8x128xf32>
    %cst_68 = arith.constant 0.951229453 : f32
    %125 = vector.broadcast %cst_68 : f32 to vector<8x128xf32>
    %126 = arith.mulf %74, %125 : vector<8x128xf32>
    %127 = arith.addf %126, %124 : vector<8x128xf32>
    %cst_69 = arith.constant 0.000000e+00 : f32
    %128 = vector.broadcast %cst_69 : f32 to vector<8x128xf32>
    %129 = arith.cmpf ogt, %76, %128 : vector<8x128xf32>
    %cst_70 = arith.constant 0.000000e+00 : f32
    %130 = vector.broadcast %cst_70 : f32 to vector<8x128xf32>
    %131 = arith.select %129, %130, %127 : vector<8x128xi1>, vector<8x128xf32>
    %cst_71 = arith.constant 1.000000e+00 : f32
    %132 = vector.broadcast %cst_71 : f32 to vector<8x128xf32>
    %133 = arith.subf %76, %132 : vector<8x128xf32>
    %cst_72 = arith.constant 0.000000e+00 : f32
    %134 = vector.broadcast %cst_72 : f32 to vector<8x128xf32>
    %135 = arith.maximumf %133, %134 : vector<8x128xf32>
    %cst_73 = arith.constant 1.000000e+00 : f32
    %136 = vector.broadcast %cst_73 : f32 to vector<8x128xf32>
    %137 = arith.cmpf ogt, %131, %136 : vector<8x128xf32>
    %138 = arith.extui %137 : vector<8x128xi1> to vector<8x128xi32>
    %139 = arith.sitofp %138 : vector<8x128xi32> to vector<8x128xf32>
    %cst_74 = arith.constant 0.000000e+00 : f32
    %140 = vector.broadcast %cst_74 : f32 to vector<8x128xf32>
    %141 = arith.cmpf ogt, %139, %140 : vector<8x128xf32>
    %cst_75 = arith.constant 0.000000e+00 : f32
    %142 = vector.broadcast %cst_75 : f32 to vector<8x128xf32>
    %143 = arith.select %141, %142, %131 : vector<8x128xi1>, vector<8x128xf32>
    %cst_76 = arith.constant 2.000000e+00 : f32
    %144 = vector.broadcast %cst_76 : f32 to vector<8x128xf32>
    %145 = arith.select %141, %144, %135 : vector<8x128xi1>, vector<8x128xf32>
    %146 = arith.addf %77, %139 : vector<8x128xf32>
    %cst_77 = arith.constant 0.000000e+00 : f32
    %147 = vector.broadcast %cst_77 : f32 to vector<8x128xf32>
    %cst_78 = arith.constant 0.951229453 : f32
    %148 = vector.broadcast %cst_78 : f32 to vector<8x128xf32>
    %149 = arith.mulf %97, %148 : vector<8x128xf32>
    %150 = arith.addf %149, %147 : vector<8x128xf32>
    %cst_79 = arith.constant 0.000000e+00 : f32
    %151 = vector.broadcast %cst_79 : f32 to vector<8x128xf32>
    %152 = arith.cmpf ogt, %99, %151 : vector<8x128xf32>
    %cst_80 = arith.constant 0.000000e+00 : f32
    %153 = vector.broadcast %cst_80 : f32 to vector<8x128xf32>
    %154 = arith.select %152, %153, %150 : vector<8x128xi1>, vector<8x128xf32>
    %cst_81 = arith.constant 1.000000e+00 : f32
    %155 = vector.broadcast %cst_81 : f32 to vector<8x128xf32>
    %156 = arith.subf %99, %155 : vector<8x128xf32>
    %cst_82 = arith.constant 0.000000e+00 : f32
    %157 = vector.broadcast %cst_82 : f32 to vector<8x128xf32>
    %158 = arith.maximumf %156, %157 : vector<8x128xf32>
    %cst_83 = arith.constant 1.000000e+00 : f32
    %159 = vector.broadcast %cst_83 : f32 to vector<8x128xf32>
    %160 = arith.cmpf ogt, %154, %159 : vector<8x128xf32>
    %161 = arith.extui %160 : vector<8x128xi1> to vector<8x128xi32>
    %162 = arith.sitofp %161 : vector<8x128xi32> to vector<8x128xf32>
    %cst_84 = arith.constant 0.000000e+00 : f32
    %163 = vector.broadcast %cst_84 : f32 to vector<8x128xf32>
    %164 = arith.cmpf ogt, %162, %163 : vector<8x128xf32>
    %cst_85 = arith.constant 0.000000e+00 : f32
    %165 = vector.broadcast %cst_85 : f32 to vector<8x128xf32>
    %166 = arith.select %164, %165, %154 : vector<8x128xi1>, vector<8x128xf32>
    %cst_86 = arith.constant 2.000000e+00 : f32
    %167 = vector.broadcast %cst_86 : f32 to vector<8x128xf32>
    %168 = arith.select %164, %167, %158 : vector<8x128xi1>, vector<8x128xf32>
    %c0_87 = arith.constant 0 : index
    %c0_88 = arith.constant 0 : index
    %169 = vector.load %arg3[%c0_87, %c0_88] : memref<128x128xf32, #tpu.memory_space<vmem>>, vector<128x128xf32>
    %cst_89 = arith.constant dense<0.000000e+00> : vector<8x128xf32>
    %170 = tpu.matmul %162, %169, %cst_89 {dimension_numbers = #tpu.dot_dimension_numbers<[1], [0], [0], [1], [0, 0, 1, 1], [], []>} : vector<8x128xf32>, vector<128x128xf32>, vector<8x128xf32> -> vector<8x128xf32>
    %cst_90 = arith.constant 0.951229453 : f32
    %171 = vector.broadcast %cst_90 : f32 to vector<8x128xf32>
    %172 = arith.mulf %120, %171 : vector<8x128xf32>
    %173 = arith.addf %172, %170 : vector<8x128xf32>
    %cst_91 = arith.constant 0.000000e+00 : f32
    %174 = vector.broadcast %cst_91 : f32 to vector<8x128xf32>
    %175 = arith.cmpf ogt, %122, %174 : vector<8x128xf32>
    %cst_92 = arith.constant 0.000000e+00 : f32
    %176 = vector.broadcast %cst_92 : f32 to vector<8x128xf32>
    %177 = arith.select %175, %176, %173 : vector<8x128xi1>, vector<8x128xf32>
    %cst_93 = arith.constant 1.000000e+00 : f32
    %178 = vector.broadcast %cst_93 : f32 to vector<8x128xf32>
    %179 = arith.subf %122, %178 : vector<8x128xf32>
    %cst_94 = arith.constant 0.000000e+00 : f32
    %180 = vector.broadcast %cst_94 : f32 to vector<8x128xf32>
    %181 = arith.maximumf %179, %180 : vector<8x128xf32>
    %cst_95 = arith.constant 1.000000e+00 : f32
    %182 = vector.broadcast %cst_95 : f32 to vector<8x128xf32>
    %183 = arith.cmpf ogt, %177, %182 : vector<8x128xf32>
    %184 = arith.extui %183 : vector<8x128xi1> to vector<8x128xi32>
    %185 = arith.sitofp %184 : vector<8x128xi32> to vector<8x128xf32>
    %cst_96 = arith.constant 0.000000e+00 : f32
    %186 = vector.broadcast %cst_96 : f32 to vector<8x128xf32>
    %187 = arith.cmpf ogt, %185, %186 : vector<8x128xf32>
    %cst_97 = arith.constant 0.000000e+00 : f32
    %188 = vector.broadcast %cst_97 : f32 to vector<8x128xf32>
    %189 = arith.select %187, %188, %177 : vector<8x128xi1>, vector<8x128xf32>
    %cst_98 = arith.constant 2.000000e+00 : f32
    %190 = vector.broadcast %cst_98 : f32 to vector<8x128xf32>
    %191 = arith.select %187, %190, %181 : vector<8x128xi1>, vector<8x128xf32>
    %c0_99 = arith.constant 0 : index
    %c0_100 = arith.constant 0 : index
    %192 = vector.load %arg4[%c0_99, %c0_100] : memref<128x128xf32, #tpu.memory_space<vmem>>, vector<128x128xf32>
    %cst_101 = arith.constant dense<0.000000e+00> : vector<8x128xf32>
    %193 = tpu.matmul %185, %192, %cst_101 {dimension_numbers = #tpu.dot_dimension_numbers<[1], [0], [0], [1], [0, 0, 1, 1], [], []>} : vector<8x128xf32>, vector<128x128xf32>, vector<8x128xf32> -> vector<8x128xf32>
    %cst_102 = arith.constant 0.951229453 : f32
    %194 = vector.broadcast %cst_102 : f32 to vector<8x128xf32>
    %195 = arith.mulf %143, %194 : vector<8x128xf32>
    %196 = arith.addf %195, %193 : vector<8x128xf32>
    %cst_103 = arith.constant 0.000000e+00 : f32
    %197 = vector.broadcast %cst_103 : f32 to vector<8x128xf32>
    %198 = arith.cmpf ogt, %145, %197 : vector<8x128xf32>
    %cst_104 = arith.constant 0.000000e+00 : f32
    %199 = vector.broadcast %cst_104 : f32 to vector<8x128xf32>
    %200 = arith.select %198, %199, %196 : vector<8x128xi1>, vector<8x128xf32>
    %cst_105 = arith.constant 1.000000e+00 : f32
    %201 = vector.broadcast %cst_105 : f32 to vector<8x128xf32>
    %202 = arith.subf %145, %201 : vector<8x128xf32>
    %cst_106 = arith.constant 0.000000e+00 : f32
    %203 = vector.broadcast %cst_106 : f32 to vector<8x128xf32>
    %204 = arith.maximumf %202, %203 : vector<8x128xf32>
    %cst_107 = arith.constant 1.000000e+00 : f32
    %205 = vector.broadcast %cst_107 : f32 to vector<8x128xf32>
    %206 = arith.cmpf ogt, %200, %205 : vector<8x128xf32>
    %207 = arith.extui %206 : vector<8x128xi1> to vector<8x128xi32>
    %208 = arith.sitofp %207 : vector<8x128xi32> to vector<8x128xf32>
    %cst_108 = arith.constant 0.000000e+00 : f32
    %209 = vector.broadcast %cst_108 : f32 to vector<8x128xf32>
    %210 = arith.cmpf ogt, %208, %209 : vector<8x128xf32>
    %cst_109 = arith.constant 0.000000e+00 : f32
    %211 = vector.broadcast %cst_109 : f32 to vector<8x128xf32>
    %212 = arith.select %210, %211, %200 : vector<8x128xi1>, vector<8x128xf32>
    %cst_110 = arith.constant 2.000000e+00 : f32
    %213 = vector.broadcast %cst_110 : f32 to vector<8x128xf32>
    %214 = arith.select %210, %213, %204 : vector<8x128xi1>, vector<8x128xf32>
    %215 = arith.addf %146, %208 : vector<8x128xf32>
    %cst_111 = arith.constant 0.000000e+00 : f32
    %216 = vector.broadcast %cst_111 : f32 to vector<8x128xf32>
    %cst_112 = arith.constant 0.951229453 : f32
    %217 = vector.broadcast %cst_112 : f32 to vector<8x128xf32>
    %218 = arith.mulf %166, %217 : vector<8x128xf32>
    %219 = arith.addf %218, %216 : vector<8x128xf32>
    %cst_113 = arith.constant 0.000000e+00 : f32
    %220 = vector.broadcast %cst_113 : f32 to vector<8x128xf32>
    %221 = arith.cmpf ogt, %168, %220 : vector<8x128xf32>
    %cst_114 = arith.constant 0.000000e+00 : f32
    %222 = vector.broadcast %cst_114 : f32 to vector<8x128xf32>
    %223 = arith.select %221, %222, %219 : vector<8x128xi1>, vector<8x128xf32>
    %cst_115 = arith.constant 1.000000e+00 : f32
    %224 = vector.broadcast %cst_115 : f32 to vector<8x128xf32>
    %225 = arith.subf %168, %224 : vector<8x128xf32>
    %cst_116 = arith.constant 0.000000e+00 : f32
    %226 = vector.broadcast %cst_116 : f32 to vector<8x128xf32>
    %227 = arith.maximumf %225, %226 : vector<8x128xf32>
    %cst_117 = arith.constant 1.000000e+00 : f32
    %228 = vector.broadcast %cst_117 : f32 to vector<8x128xf32>
    %229 = arith.cmpf ogt, %223, %228 : vector<8x128xf32>
    %230 = arith.extui %229 : vector<8x128xi1> to vector<8x128xi32>
    %231 = arith.sitofp %230 : vector<8x128xi32> to vector<8x128xf32>
    %cst_118 = arith.constant 0.000000e+00 : f32
    %232 = vector.broadcast %cst_118 : f32 to vector<8x128xf32>
    %233 = arith.cmpf ogt, %231, %232 : vector<8x128xf32>
    %cst_119 = arith.constant 0.000000e+00 : f32
    %234 = vector.broadcast %cst_119 : f32 to vector<8x128xf32>
    %235 = arith.select %233, %234, %223 : vector<8x128xi1>, vector<8x128xf32>
    %cst_120 = arith.constant 2.000000e+00 : f32
    %236 = vector.broadcast %cst_120 : f32 to vector<8x128xf32>
    %237 = arith.select %233, %236, %227 : vector<8x128xi1>, vector<8x128xf32>
    %c0_121 = arith.constant 0 : index
    %c0_122 = arith.constant 0 : index
    %238 = vector.load %arg3[%c0_121, %c0_122] : memref<128x128xf32, #tpu.memory_space<vmem>>, vector<128x128xf32>
    %cst_123 = arith.constant dense<0.000000e+00> : vector<8x128xf32>
    %239 = tpu.matmul %231, %238, %cst_123 {dimension_numbers = #tpu.dot_dimension_numbers<[1], [0], [0], [1], [0, 0, 1, 1], [], []>} : vector<8x128xf32>, vector<128x128xf32>, vector<8x128xf32> -> vector<8x128xf32>
    %cst_124 = arith.constant 0.951229453 : f32
    %240 = vector.broadcast %cst_124 : f32 to vector<8x128xf32>
    %241 = arith.mulf %189, %240 : vector<8x128xf32>
    %242 = arith.addf %241, %239 : vector<8x128xf32>
    %cst_125 = arith.constant 0.000000e+00 : f32
    %243 = vector.broadcast %cst_125 : f32 to vector<8x128xf32>
    %244 = arith.cmpf ogt, %191, %243 : vector<8x128xf32>
    %cst_126 = arith.constant 0.000000e+00 : f32
    %245 = vector.broadcast %cst_126 : f32 to vector<8x128xf32>
    %246 = arith.select %244, %245, %242 : vector<8x128xi1>, vector<8x128xf32>
    %cst_127 = arith.constant 1.000000e+00 : f32
    %247 = vector.broadcast %cst_127 : f32 to vector<8x128xf32>
    %248 = arith.subf %191, %247 : vector<8x128xf32>
    %cst_128 = arith.constant 0.000000e+00 : f32
    %249 = vector.broadcast %cst_128 : f32 to vector<8x128xf32>
    %250 = arith.maximumf %248, %249 : vector<8x128xf32>
    %cst_129 = arith.constant 1.000000e+00 : f32
    %251 = vector.broadcast %cst_129 : f32 to vector<8x128xf32>
    %252 = arith.cmpf ogt, %246, %251 : vector<8x128xf32>
    %253 = arith.extui %252 : vector<8x128xi1> to vector<8x128xi32>
    %254 = arith.sitofp %253 : vector<8x128xi32> to vector<8x128xf32>
    %cst_130 = arith.constant 0.000000e+00 : f32
    %255 = vector.broadcast %cst_130 : f32 to vector<8x128xf32>
    %256 = arith.cmpf ogt, %254, %255 : vector<8x128xf32>
    %cst_131 = arith.constant 0.000000e+00 : f32
    %257 = vector.broadcast %cst_131 : f32 to vector<8x128xf32>
    %258 = arith.select %256, %257, %246 : vector<8x128xi1>, vector<8x128xf32>
    %cst_132 = arith.constant 2.000000e+00 : f32
    %259 = vector.broadcast %cst_132 : f32 to vector<8x128xf32>
    %260 = arith.select %256, %259, %250 : vector<8x128xi1>, vector<8x128xf32>
    %c0_133 = arith.constant 0 : index
    %c0_134 = arith.constant 0 : index
    %261 = vector.load %arg4[%c0_133, %c0_134] : memref<128x128xf32, #tpu.memory_space<vmem>>, vector<128x128xf32>
    %cst_135 = arith.constant dense<0.000000e+00> : vector<8x128xf32>
    %262 = tpu.matmul %254, %261, %cst_135 {dimension_numbers = #tpu.dot_dimension_numbers<[1], [0], [0], [1], [0, 0, 1, 1], [], []>} : vector<8x128xf32>, vector<128x128xf32>, vector<8x128xf32> -> vector<8x128xf32>
    %cst_136 = arith.constant 0.951229453 : f32
    %263 = vector.broadcast %cst_136 : f32 to vector<8x128xf32>
    %264 = arith.mulf %212, %263 : vector<8x128xf32>
    %265 = arith.addf %264, %262 : vector<8x128xf32>
    %cst_137 = arith.constant 0.000000e+00 : f32
    %266 = vector.broadcast %cst_137 : f32 to vector<8x128xf32>
    %267 = arith.cmpf ogt, %214, %266 : vector<8x128xf32>
    %cst_138 = arith.constant 0.000000e+00 : f32
    %268 = vector.broadcast %cst_138 : f32 to vector<8x128xf32>
    %269 = arith.select %267, %268, %265 : vector<8x128xi1>, vector<8x128xf32>
    %cst_139 = arith.constant 1.000000e+00 : f32
    %270 = vector.broadcast %cst_139 : f32 to vector<8x128xf32>
    %271 = arith.subf %214, %270 : vector<8x128xf32>
    %cst_140 = arith.constant 0.000000e+00 : f32
    %272 = vector.broadcast %cst_140 : f32 to vector<8x128xf32>
    %273 = arith.maximumf %271, %272 : vector<8x128xf32>
    %cst_141 = arith.constant 1.000000e+00 : f32
    %274 = vector.broadcast %cst_141 : f32 to vector<8x128xf32>
    %275 = arith.cmpf ogt, %269, %274 : vector<8x128xf32>
    %276 = arith.extui %275 : vector<8x128xi1> to vector<8x128xi32>
    %277 = arith.sitofp %276 : vector<8x128xi32> to vector<8x128xf32>
    %cst_142 = arith.constant 0.000000e+00 : f32
    %278 = vector.broadcast %cst_142 : f32 to vector<8x128xf32>
    %279 = arith.cmpf ogt, %277, %278 : vector<8x128xf32>
    %cst_143 = arith.constant 0.000000e+00 : f32
    %280 = vector.broadcast %cst_143 : f32 to vector<8x128xf32>
    %281 = arith.select %279, %280, %269 : vector<8x128xi1>, vector<8x128xf32>
    %cst_144 = arith.constant 2.000000e+00 : f32
    %282 = vector.broadcast %cst_144 : f32 to vector<8x128xf32>
    %283 = arith.select %279, %282, %273 : vector<8x128xi1>, vector<8x128xf32>
    %284 = arith.addf %215, %277 : vector<8x128xf32>
    %cst_145 = arith.constant 0.000000e+00 : f32
    %285 = vector.broadcast %cst_145 : f32 to vector<8x128xf32>
    %cst_146 = arith.constant 0.951229453 : f32
    %286 = vector.broadcast %cst_146 : f32 to vector<8x128xf32>
    %287 = arith.mulf %235, %286 : vector<8x128xf32>
    %288 = arith.addf %287, %285 : vector<8x128xf32>
    %cst_147 = arith.constant 0.000000e+00 : f32
    %289 = vector.broadcast %cst_147 : f32 to vector<8x128xf32>
    %290 = arith.cmpf ogt, %237, %289 : vector<8x128xf32>
    %cst_148 = arith.constant 0.000000e+00 : f32
    %291 = vector.broadcast %cst_148 : f32 to vector<8x128xf32>
    %292 = arith.select %290, %291, %288 : vector<8x128xi1>, vector<8x128xf32>
    %cst_149 = arith.constant 1.000000e+00 : f32
    %293 = vector.broadcast %cst_149 : f32 to vector<8x128xf32>
    %294 = arith.subf %237, %293 : vector<8x128xf32>
    %cst_150 = arith.constant 0.000000e+00 : f32
    %295 = vector.broadcast %cst_150 : f32 to vector<8x128xf32>
    %296 = arith.maximumf %294, %295 : vector<8x128xf32>
    %cst_151 = arith.constant 1.000000e+00 : f32
    %297 = vector.broadcast %cst_151 : f32 to vector<8x128xf32>
    %298 = arith.cmpf ogt, %292, %297 : vector<8x128xf32>
    %299 = arith.extui %298 : vector<8x128xi1> to vector<8x128xi32>
    %300 = arith.sitofp %299 : vector<8x128xi32> to vector<8x128xf32>
    %cst_152 = arith.constant 0.000000e+00 : f32
    %301 = vector.broadcast %cst_152 : f32 to vector<8x128xf32>
    %302 = arith.cmpf ogt, %300, %301 : vector<8x128xf32>
    %cst_153 = arith.constant 0.000000e+00 : f32
    %303 = vector.broadcast %cst_153 : f32 to vector<8x128xf32>
    %304 = arith.select %302, %303, %292 : vector<8x128xi1>, vector<8x128xf32>
    %cst_154 = arith.constant 2.000000e+00 : f32
    %305 = vector.broadcast %cst_154 : f32 to vector<8x128xf32>
    %306 = arith.select %302, %305, %296 : vector<8x128xi1>, vector<8x128xf32>
    %c0_155 = arith.constant 0 : index
    %c0_156 = arith.constant 0 : index
    %307 = vector.load %arg3[%c0_155, %c0_156] : memref<128x128xf32, #tpu.memory_space<vmem>>, vector<128x128xf32>
    %cst_157 = arith.constant dense<0.000000e+00> : vector<8x128xf32>
    %308 = tpu.matmul %300, %307, %cst_157 {dimension_numbers = #tpu.dot_dimension_numbers<[1], [0], [0], [1], [0, 0, 1, 1], [], []>} : vector<8x128xf32>, vector<128x128xf32>, vector<8x128xf32> -> vector<8x128xf32>
    %cst_158 = arith.constant 0.951229453 : f32
    %309 = vector.broadcast %cst_158 : f32 to vector<8x128xf32>
    %310 = arith.mulf %258, %309 : vector<8x128xf32>
    %311 = arith.addf %310, %308 : vector<8x128xf32>
    %cst_159 = arith.constant 0.000000e+00 : f32
    %312 = vector.broadcast %cst_159 : f32 to vector<8x128xf32>
    %313 = arith.cmpf ogt, %260, %312 : vector<8x128xf32>
    %cst_160 = arith.constant 0.000000e+00 : f32
    %314 = vector.broadcast %cst_160 : f32 to vector<8x128xf32>
    %315 = arith.select %313, %314, %311 : vector<8x128xi1>, vector<8x128xf32>
    %cst_161 = arith.constant 1.000000e+00 : f32
    %316 = vector.broadcast %cst_161 : f32 to vector<8x128xf32>
    %317 = arith.subf %260, %316 : vector<8x128xf32>
    %cst_162 = arith.constant 0.000000e+00 : f32
    %318 = vector.broadcast %cst_162 : f32 to vector<8x128xf32>
    %319 = arith.maximumf %317, %318 : vector<8x128xf32>
    %cst_163 = arith.constant 1.000000e+00 : f32
    %320 = vector.broadcast %cst_163 : f32 to vector<8x128xf32>
    %321 = arith.cmpf ogt, %315, %320 : vector<8x128xf32>
    %322 = arith.extui %321 : vector<8x128xi1> to vector<8x128xi32>
    %323 = arith.sitofp %322 : vector<8x128xi32> to vector<8x128xf32>
    %cst_164 = arith.constant 0.000000e+00 : f32
    %324 = vector.broadcast %cst_164 : f32 to vector<8x128xf32>
    %325 = arith.cmpf ogt, %323, %324 : vector<8x128xf32>
    %cst_165 = arith.constant 0.000000e+00 : f32
    %326 = vector.broadcast %cst_165 : f32 to vector<8x128xf32>
    %327 = arith.select %325, %326, %315 : vector<8x128xi1>, vector<8x128xf32>
    %cst_166 = arith.constant 2.000000e+00 : f32
    %328 = vector.broadcast %cst_166 : f32 to vector<8x128xf32>
    %329 = arith.select %325, %328, %319 : vector<8x128xi1>, vector<8x128xf32>
    %c0_167 = arith.constant 0 : index
    %c0_168 = arith.constant 0 : index
    %330 = vector.load %arg4[%c0_167, %c0_168] : memref<128x128xf32, #tpu.memory_space<vmem>>, vector<128x128xf32>
    %cst_169 = arith.constant dense<0.000000e+00> : vector<8x128xf32>
    %331 = tpu.matmul %323, %330, %cst_169 {dimension_numbers = #tpu.dot_dimension_numbers<[1], [0], [0], [1], [0, 0, 1, 1], [], []>} : vector<8x128xf32>, vector<128x128xf32>, vector<8x128xf32> -> vector<8x128xf32>
    %cst_170 = arith.constant 0.951229453 : f32
    %332 = vector.broadcast %cst_170 : f32 to vector<8x128xf32>
    %333 = arith.mulf %281, %332 : vector<8x128xf32>
    %334 = arith.addf %333, %331 : vector<8x128xf32>
    %cst_171 = arith.constant 0.000000e+00 : f32
    %335 = vector.broadcast %cst_171 : f32 to vector<8x128xf32>
    %336 = arith.cmpf ogt, %283, %335 : vector<8x128xf32>
    %cst_172 = arith.constant 0.000000e+00 : f32
    %337 = vector.broadcast %cst_172 : f32 to vector<8x128xf32>
    %338 = arith.select %336, %337, %334 : vector<8x128xi1>, vector<8x128xf32>
    %cst_173 = arith.constant 1.000000e+00 : f32
    %339 = vector.broadcast %cst_173 : f32 to vector<8x128xf32>
    %340 = arith.subf %283, %339 : vector<8x128xf32>
    %cst_174 = arith.constant 0.000000e+00 : f32
    %341 = vector.broadcast %cst_174 : f32 to vector<8x128xf32>
    %342 = arith.maximumf %340, %341 : vector<8x128xf32>
    %cst_175 = arith.constant 1.000000e+00 : f32
    %343 = vector.broadcast %cst_175 : f32 to vector<8x128xf32>
    %344 = arith.cmpf ogt, %338, %343 : vector<8x128xf32>
    %345 = arith.extui %344 : vector<8x128xi1> to vector<8x128xi32>
    %346 = arith.sitofp %345 : vector<8x128xi32> to vector<8x128xf32>
    %cst_176 = arith.constant 0.000000e+00 : f32
    %347 = vector.broadcast %cst_176 : f32 to vector<8x128xf32>
    %348 = arith.cmpf ogt, %346, %347 : vector<8x128xf32>
    %cst_177 = arith.constant 0.000000e+00 : f32
    %349 = vector.broadcast %cst_177 : f32 to vector<8x128xf32>
    %350 = arith.select %348, %349, %338 : vector<8x128xi1>, vector<8x128xf32>
    %cst_178 = arith.constant 2.000000e+00 : f32
    %351 = vector.broadcast %cst_178 : f32 to vector<8x128xf32>
    %352 = arith.select %348, %351, %342 : vector<8x128xi1>, vector<8x128xf32>
    %353 = arith.addf %284, %346 : vector<8x128xf32>
    %cst_179 = arith.constant 0.000000e+00 : f32
    %354 = vector.broadcast %cst_179 : f32 to vector<8x128xf32>
    %cst_180 = arith.constant 0.951229453 : f32
    %355 = vector.broadcast %cst_180 : f32 to vector<8x128xf32>
    %356 = arith.mulf %304, %355 : vector<8x128xf32>
    %357 = arith.addf %356, %354 : vector<8x128xf32>
    %cst_181 = arith.constant 0.000000e+00 : f32
    %358 = vector.broadcast %cst_181 : f32 to vector<8x128xf32>
    %359 = arith.cmpf ogt, %306, %358 : vector<8x128xf32>
    %cst_182 = arith.constant 0.000000e+00 : f32
    %360 = vector.broadcast %cst_182 : f32 to vector<8x128xf32>
    %361 = arith.select %359, %360, %357 : vector<8x128xi1>, vector<8x128xf32>
    %cst_183 = arith.constant 1.000000e+00 : f32
    %362 = vector.broadcast %cst_183 : f32 to vector<8x128xf32>
    %363 = arith.subf %306, %362 : vector<8x128xf32>
    %cst_184 = arith.constant 0.000000e+00 : f32
    %364 = vector.broadcast %cst_184 : f32 to vector<8x128xf32>
    %365 = arith.maximumf %363, %364 : vector<8x128xf32>
    %cst_185 = arith.constant 1.000000e+00 : f32
    %366 = vector.broadcast %cst_185 : f32 to vector<8x128xf32>
    %367 = arith.cmpf ogt, %361, %366 : vector<8x128xf32>
    %368 = arith.extui %367 : vector<8x128xi1> to vector<8x128xi32>
    %369 = arith.sitofp %368 : vector<8x128xi32> to vector<8x128xf32>
    %cst_186 = arith.constant 0.000000e+00 : f32
    %370 = vector.broadcast %cst_186 : f32 to vector<8x128xf32>
    %371 = arith.cmpf ogt, %369, %370 : vector<8x128xf32>
    %cst_187 = arith.constant 0.000000e+00 : f32
    %372 = vector.broadcast %cst_187 : f32 to vector<8x128xf32>
    %373 = arith.select %371, %372, %361 : vector<8x128xi1>, vector<8x128xf32>
    %cst_188 = arith.constant 2.000000e+00 : f32
    %374 = vector.broadcast %cst_188 : f32 to vector<8x128xf32>
    %375 = arith.select %371, %374, %365 : vector<8x128xi1>, vector<8x128xf32>
    %c0_189 = arith.constant 0 : index
    %c0_190 = arith.constant 0 : index
    %376 = vector.load %arg3[%c0_189, %c0_190] : memref<128x128xf32, #tpu.memory_space<vmem>>, vector<128x128xf32>
    %cst_191 = arith.constant dense<0.000000e+00> : vector<8x128xf32>
    %377 = tpu.matmul %369, %376, %cst_191 {dimension_numbers = #tpu.dot_dimension_numbers<[1], [0], [0], [1], [0, 0, 1, 1], [], []>} : vector<8x128xf32>, vector<128x128xf32>, vector<8x128xf32> -> vector<8x128xf32>
    %cst_192 = arith.constant 0.951229453 : f32
    %378 = vector.broadcast %cst_192 : f32 to vector<8x128xf32>
    %379 = arith.mulf %327, %378 : vector<8x128xf32>
    %380 = arith.addf %379, %377 : vector<8x128xf32>
    %cst_193 = arith.constant 0.000000e+00 : f32
    %381 = vector.broadcast %cst_193 : f32 to vector<8x128xf32>
    %382 = arith.cmpf ogt, %329, %381 : vector<8x128xf32>
    %cst_194 = arith.constant 0.000000e+00 : f32
    %383 = vector.broadcast %cst_194 : f32 to vector<8x128xf32>
    %384 = arith.select %382, %383, %380 : vector<8x128xi1>, vector<8x128xf32>
    %cst_195 = arith.constant 1.000000e+00 : f32
    %385 = vector.broadcast %cst_195 : f32 to vector<8x128xf32>
    %386 = arith.subf %329, %385 : vector<8x128xf32>
    %cst_196 = arith.constant 0.000000e+00 : f32
    %387 = vector.broadcast %cst_196 : f32 to vector<8x128xf32>
    %388 = arith.maximumf %386, %387 : vector<8x128xf32>
    %cst_197 = arith.constant 1.000000e+00 : f32
    %389 = vector.broadcast %cst_197 : f32 to vector<8x128xf32>
    %390 = arith.cmpf ogt, %384, %389 : vector<8x128xf32>
    %391 = arith.extui %390 : vector<8x128xi1> to vector<8x128xi32>
    %392 = arith.sitofp %391 : vector<8x128xi32> to vector<8x128xf32>
    %cst_198 = arith.constant 0.000000e+00 : f32
    %393 = vector.broadcast %cst_198 : f32 to vector<8x128xf32>
    %394 = arith.cmpf ogt, %392, %393 : vector<8x128xf32>
    %cst_199 = arith.constant 0.000000e+00 : f32
    %395 = vector.broadcast %cst_199 : f32 to vector<8x128xf32>
    %396 = arith.select %394, %395, %384 : vector<8x128xi1>, vector<8x128xf32>
    %cst_200 = arith.constant 2.000000e+00 : f32
    %397 = vector.broadcast %cst_200 : f32 to vector<8x128xf32>
    %398 = arith.select %394, %397, %388 : vector<8x128xi1>, vector<8x128xf32>
    %c0_201 = arith.constant 0 : index
    %c0_202 = arith.constant 0 : index
    %399 = vector.load %arg4[%c0_201, %c0_202] : memref<128x128xf32, #tpu.memory_space<vmem>>, vector<128x128xf32>
    %cst_203 = arith.constant dense<0.000000e+00> : vector<8x128xf32>
    %400 = tpu.matmul %392, %399, %cst_203 {dimension_numbers = #tpu.dot_dimension_numbers<[1], [0], [0], [1], [0, 0, 1, 1], [], []>} : vector<8x128xf32>, vector<128x128xf32>, vector<8x128xf32> -> vector<8x128xf32>
    %cst_204 = arith.constant 0.951229453 : f32
    %401 = vector.broadcast %cst_204 : f32 to vector<8x128xf32>
    %402 = arith.mulf %350, %401 : vector<8x128xf32>
    %403 = arith.addf %402, %400 : vector<8x128xf32>
    %cst_205 = arith.constant 0.000000e+00 : f32
    %404 = vector.broadcast %cst_205 : f32 to vector<8x128xf32>
    %405 = arith.cmpf ogt, %352, %404 : vector<8x128xf32>
    %cst_206 = arith.constant 0.000000e+00 : f32
    %406 = vector.broadcast %cst_206 : f32 to vector<8x128xf32>
    %407 = arith.select %405, %406, %403 : vector<8x128xi1>, vector<8x128xf32>
    %cst_207 = arith.constant 1.000000e+00 : f32
    %408 = vector.broadcast %cst_207 : f32 to vector<8x128xf32>
    %409 = arith.subf %352, %408 : vector<8x128xf32>
    %cst_208 = arith.constant 0.000000e+00 : f32
    %410 = vector.broadcast %cst_208 : f32 to vector<8x128xf32>
    %411 = arith.maximumf %409, %410 : vector<8x128xf32>
    %cst_209 = arith.constant 1.000000e+00 : f32
    %412 = vector.broadcast %cst_209 : f32 to vector<8x128xf32>
    %413 = arith.cmpf ogt, %407, %412 : vector<8x128xf32>
    %414 = arith.extui %413 : vector<8x128xi1> to vector<8x128xi32>
    %415 = arith.sitofp %414 : vector<8x128xi32> to vector<8x128xf32>
    %cst_210 = arith.constant 0.000000e+00 : f32
    %416 = vector.broadcast %cst_210 : f32 to vector<8x128xf32>
    %417 = arith.cmpf ogt, %415, %416 : vector<8x128xf32>
    %cst_211 = arith.constant 0.000000e+00 : f32
    %418 = vector.broadcast %cst_211 : f32 to vector<8x128xf32>
    %419 = arith.select %417, %418, %407 : vector<8x128xi1>, vector<8x128xf32>
    %cst_212 = arith.constant 2.000000e+00 : f32
    %420 = vector.broadcast %cst_212 : f32 to vector<8x128xf32>
    %421 = arith.select %417, %420, %411 : vector<8x128xi1>, vector<8x128xf32>
    %422 = arith.addf %353, %415 : vector<8x128xf32>
    %cst_213 = arith.constant 0.000000e+00 : f32
    %423 = vector.broadcast %cst_213 : f32 to vector<8x128xf32>
    %cst_214 = arith.constant 0.951229453 : f32
    %424 = vector.broadcast %cst_214 : f32 to vector<8x128xf32>
    %425 = arith.mulf %373, %424 : vector<8x128xf32>
    %426 = arith.addf %425, %423 : vector<8x128xf32>
    %cst_215 = arith.constant 0.000000e+00 : f32
    %427 = vector.broadcast %cst_215 : f32 to vector<8x128xf32>
    %428 = arith.cmpf ogt, %375, %427 : vector<8x128xf32>
    %cst_216 = arith.constant 0.000000e+00 : f32
    %429 = vector.broadcast %cst_216 : f32 to vector<8x128xf32>
    %430 = arith.select %428, %429, %426 : vector<8x128xi1>, vector<8x128xf32>
    %cst_217 = arith.constant 1.000000e+00 : f32
    %431 = vector.broadcast %cst_217 : f32 to vector<8x128xf32>
    %432 = arith.subf %375, %431 : vector<8x128xf32>
    %cst_218 = arith.constant 0.000000e+00 : f32
    %433 = vector.broadcast %cst_218 : f32 to vector<8x128xf32>
    %434 = arith.maximumf %432, %433 : vector<8x128xf32>
    %cst_219 = arith.constant 1.000000e+00 : f32
    %435 = vector.broadcast %cst_219 : f32 to vector<8x128xf32>
    %436 = arith.cmpf ogt, %430, %435 : vector<8x128xf32>
    %437 = arith.extui %436 : vector<8x128xi1> to vector<8x128xi32>
    %438 = arith.sitofp %437 : vector<8x128xi32> to vector<8x128xf32>
    %cst_220 = arith.constant 0.000000e+00 : f32
    %439 = vector.broadcast %cst_220 : f32 to vector<8x128xf32>
    %440 = arith.cmpf ogt, %438, %439 : vector<8x128xf32>
    %cst_221 = arith.constant 0.000000e+00 : f32
    %441 = vector.broadcast %cst_221 : f32 to vector<8x128xf32>
    %442 = arith.select %440, %441, %430 : vector<8x128xi1>, vector<8x128xf32>
    %cst_222 = arith.constant 2.000000e+00 : f32
    %443 = vector.broadcast %cst_222 : f32 to vector<8x128xf32>
    %444 = arith.select %440, %443, %434 : vector<8x128xi1>, vector<8x128xf32>
    %c0_223 = arith.constant 0 : index
    %c0_224 = arith.constant 0 : index
    %445 = vector.load %arg3[%c0_223, %c0_224] : memref<128x128xf32, #tpu.memory_space<vmem>>, vector<128x128xf32>
    %cst_225 = arith.constant dense<0.000000e+00> : vector<8x128xf32>
    %446 = tpu.matmul %438, %445, %cst_225 {dimension_numbers = #tpu.dot_dimension_numbers<[1], [0], [0], [1], [0, 0, 1, 1], [], []>} : vector<8x128xf32>, vector<128x128xf32>, vector<8x128xf32> -> vector<8x128xf32>
    %cst_226 = arith.constant 0.951229453 : f32
    %447 = vector.broadcast %cst_226 : f32 to vector<8x128xf32>
    %448 = arith.mulf %396, %447 : vector<8x128xf32>
    %449 = arith.addf %448, %446 : vector<8x128xf32>
    %cst_227 = arith.constant 0.000000e+00 : f32
    %450 = vector.broadcast %cst_227 : f32 to vector<8x128xf32>
    %451 = arith.cmpf ogt, %398, %450 : vector<8x128xf32>
    %cst_228 = arith.constant 0.000000e+00 : f32
    %452 = vector.broadcast %cst_228 : f32 to vector<8x128xf32>
    %453 = arith.select %451, %452, %449 : vector<8x128xi1>, vector<8x128xf32>
    %cst_229 = arith.constant 1.000000e+00 : f32
    %454 = vector.broadcast %cst_229 : f32 to vector<8x128xf32>
    %455 = arith.subf %398, %454 : vector<8x128xf32>
    %cst_230 = arith.constant 0.000000e+00 : f32
    %456 = vector.broadcast %cst_230 : f32 to vector<8x128xf32>
    %457 = arith.maximumf %455, %456 : vector<8x128xf32>
    %cst_231 = arith.constant 1.000000e+00 : f32
    %458 = vector.broadcast %cst_231 : f32 to vector<8x128xf32>
    %459 = arith.cmpf ogt, %453, %458 : vector<8x128xf32>
    %460 = arith.extui %459 : vector<8x128xi1> to vector<8x128xi32>
    %461 = arith.sitofp %460 : vector<8x128xi32> to vector<8x128xf32>
    %cst_232 = arith.constant 0.000000e+00 : f32
    %462 = vector.broadcast %cst_232 : f32 to vector<8x128xf32>
    %463 = arith.cmpf ogt, %461, %462 : vector<8x128xf32>
    %cst_233 = arith.constant 0.000000e+00 : f32
    %464 = vector.broadcast %cst_233 : f32 to vector<8x128xf32>
    %465 = arith.select %463, %464, %453 : vector<8x128xi1>, vector<8x128xf32>
    %cst_234 = arith.constant 2.000000e+00 : f32
    %466 = vector.broadcast %cst_234 : f32 to vector<8x128xf32>
    %467 = arith.select %463, %466, %457 : vector<8x128xi1>, vector<8x128xf32>
    %c0_235 = arith.constant 0 : index
    %c0_236 = arith.constant 0 : index
    %468 = vector.load %arg4[%c0_235, %c0_236] : memref<128x128xf32, #tpu.memory_space<vmem>>, vector<128x128xf32>
    %cst_237 = arith.constant dense<0.000000e+00> : vector<8x128xf32>
    %469 = tpu.matmul %461, %468, %cst_237 {dimension_numbers = #tpu.dot_dimension_numbers<[1], [0], [0], [1], [0, 0, 1, 1], [], []>} : vector<8x128xf32>, vector<128x128xf32>, vector<8x128xf32> -> vector<8x128xf32>
    %cst_238 = arith.constant 0.951229453 : f32
    %470 = vector.broadcast %cst_238 : f32 to vector<8x128xf32>
    %471 = arith.mulf %419, %470 : vector<8x128xf32>
    %472 = arith.addf %471, %469 : vector<8x128xf32>
    %cst_239 = arith.constant 0.000000e+00 : f32
    %473 = vector.broadcast %cst_239 : f32 to vector<8x128xf32>
    %474 = arith.cmpf ogt, %421, %473 : vector<8x128xf32>
    %cst_240 = arith.constant 0.000000e+00 : f32
    %475 = vector.broadcast %cst_240 : f32 to vector<8x128xf32>
    %476 = arith.select %474, %475, %472 : vector<8x128xi1>, vector<8x128xf32>
    %cst_241 = arith.constant 1.000000e+00 : f32
    %477 = vector.broadcast %cst_241 : f32 to vector<8x128xf32>
    %478 = arith.subf %421, %477 : vector<8x128xf32>
    %cst_242 = arith.constant 0.000000e+00 : f32
    %479 = vector.broadcast %cst_242 : f32 to vector<8x128xf32>
    %480 = arith.maximumf %478, %479 : vector<8x128xf32>
    %cst_243 = arith.constant 1.000000e+00 : f32
    %481 = vector.broadcast %cst_243 : f32 to vector<8x128xf32>
    %482 = arith.cmpf ogt, %476, %481 : vector<8x128xf32>
    %483 = arith.extui %482 : vector<8x128xi1> to vector<8x128xi32>
    %484 = arith.sitofp %483 : vector<8x128xi32> to vector<8x128xf32>
    %cst_244 = arith.constant 0.000000e+00 : f32
    %485 = vector.broadcast %cst_244 : f32 to vector<8x128xf32>
    %486 = arith.cmpf ogt, %484, %485 : vector<8x128xf32>
    %cst_245 = arith.constant 0.000000e+00 : f32
    %487 = vector.broadcast %cst_245 : f32 to vector<8x128xf32>
    %488 = arith.select %486, %487, %476 : vector<8x128xi1>, vector<8x128xf32>
    %cst_246 = arith.constant 2.000000e+00 : f32
    %489 = vector.broadcast %cst_246 : f32 to vector<8x128xf32>
    %490 = arith.select %486, %489, %480 : vector<8x128xi1>, vector<8x128xf32>
    %491 = arith.addf %422, %484 : vector<8x128xf32>
    %cst_247 = arith.constant 0.000000e+00 : f32
    %492 = vector.broadcast %cst_247 : f32 to vector<8x128xf32>
    %cst_248 = arith.constant 0.951229453 : f32
    %493 = vector.broadcast %cst_248 : f32 to vector<8x128xf32>
    %494 = arith.mulf %442, %493 : vector<8x128xf32>
    %495 = arith.addf %494, %492 : vector<8x128xf32>
    %cst_249 = arith.constant 0.000000e+00 : f32
    %496 = vector.broadcast %cst_249 : f32 to vector<8x128xf32>
    %497 = arith.cmpf ogt, %444, %496 : vector<8x128xf32>
    %cst_250 = arith.constant 0.000000e+00 : f32
    %498 = vector.broadcast %cst_250 : f32 to vector<8x128xf32>
    %499 = arith.select %497, %498, %495 : vector<8x128xi1>, vector<8x128xf32>
    %cst_251 = arith.constant 1.000000e+00 : f32
    %500 = vector.broadcast %cst_251 : f32 to vector<8x128xf32>
    %501 = arith.cmpf ogt, %499, %500 : vector<8x128xf32>
    %502 = arith.extui %501 : vector<8x128xi1> to vector<8x128xi32>
    %503 = arith.sitofp %502 : vector<8x128xi32> to vector<8x128xf32>
    %c0_252 = arith.constant 0 : index
    %c0_253 = arith.constant 0 : index
    %504 = vector.load %arg3[%c0_252, %c0_253] : memref<128x128xf32, #tpu.memory_space<vmem>>, vector<128x128xf32>
    %cst_254 = arith.constant dense<0.000000e+00> : vector<8x128xf32>
    %505 = tpu.matmul %503, %504, %cst_254 {dimension_numbers = #tpu.dot_dimension_numbers<[1], [0], [0], [1], [0, 0, 1, 1], [], []>} : vector<8x128xf32>, vector<128x128xf32>, vector<8x128xf32> -> vector<8x128xf32>
    %cst_255 = arith.constant 0.951229453 : f32
    %506 = vector.broadcast %cst_255 : f32 to vector<8x128xf32>
    %507 = arith.mulf %465, %506 : vector<8x128xf32>
    %508 = arith.addf %507, %505 : vector<8x128xf32>
    %cst_256 = arith.constant 0.000000e+00 : f32
    %509 = vector.broadcast %cst_256 : f32 to vector<8x128xf32>
    %510 = arith.cmpf ogt, %467, %509 : vector<8x128xf32>
    %cst_257 = arith.constant 0.000000e+00 : f32
    %511 = vector.broadcast %cst_257 : f32 to vector<8x128xf32>
    %512 = arith.select %510, %511, %508 : vector<8x128xi1>, vector<8x128xf32>
    %cst_258 = arith.constant 1.000000e+00 : f32
    %513 = vector.broadcast %cst_258 : f32 to vector<8x128xf32>
    %514 = arith.cmpf ogt, %512, %513 : vector<8x128xf32>
    %515 = arith.extui %514 : vector<8x128xi1> to vector<8x128xi32>
    %516 = arith.sitofp %515 : vector<8x128xi32> to vector<8x128xf32>
    %c0_259 = arith.constant 0 : index
    %c0_260 = arith.constant 0 : index
    %517 = vector.load %arg4[%c0_259, %c0_260] : memref<128x128xf32, #tpu.memory_space<vmem>>, vector<128x128xf32>
    %cst_261 = arith.constant dense<0.000000e+00> : vector<8x128xf32>
    %518 = tpu.matmul %516, %517, %cst_261 {dimension_numbers = #tpu.dot_dimension_numbers<[1], [0], [0], [1], [0, 0, 1, 1], [], []>} : vector<8x128xf32>, vector<128x128xf32>, vector<8x128xf32> -> vector<8x128xf32>
    %cst_262 = arith.constant 0.951229453 : f32
    %519 = vector.broadcast %cst_262 : f32 to vector<8x128xf32>
    %520 = arith.mulf %488, %519 : vector<8x128xf32>
    %521 = arith.addf %520, %518 : vector<8x128xf32>
    %cst_263 = arith.constant 0.000000e+00 : f32
    %522 = vector.broadcast %cst_263 : f32 to vector<8x128xf32>
    %523 = arith.cmpf ogt, %490, %522 : vector<8x128xf32>
    %cst_264 = arith.constant 0.000000e+00 : f32
    %524 = vector.broadcast %cst_264 : f32 to vector<8x128xf32>
    %525 = arith.select %523, %524, %521 : vector<8x128xi1>, vector<8x128xf32>
    %cst_265 = arith.constant 1.000000e+00 : f32
    %526 = vector.broadcast %cst_265 : f32 to vector<8x128xf32>
    %527 = arith.cmpf ogt, %525, %526 : vector<8x128xf32>
    %528 = arith.extui %527 : vector<8x128xi1> to vector<8x128xi32>
    %529 = arith.sitofp %528 : vector<8x128xi32> to vector<8x128xf32>
    %530 = arith.addf %491, %529 : vector<8x128xf32>
    %cst_266 = arith.constant 1.250000e-01 : f32
    %531 = vector.broadcast %cst_266 : f32 to vector<8x128xf32>
    %532 = arith.mulf %530, %531 : vector<8x128xf32>
    %c0_267 = arith.constant 0 : index
    %c0_268 = arith.constant 0 : index
    %533 = vector.load %arg5[%c0_267, %c0_268] : memref<8x128xf32, #tpu.memory_space<vmem>>, vector<8x128xf32>
    tpu.vector_store %arg5[%c0_267, %c0_268], %532 {strides = array<i32>} : memref<8x128xf32, #tpu.memory_space<vmem>>, vector<8x128xf32>,
    return
  }
  func.func @transform_0(%arg0: i32) -> (i32, i32) {
    %c0_i32 = arith.constant 0 : i32
    %c0_i32_0 = arith.constant 0 : i32
    return %arg0, %c0_i32 : i32, i32
  }
  func.func @transform_1(%arg0: i32) -> (i32, i32) {
    %c0_i32 = arith.constant 0 : i32
    %c0_i32_0 = arith.constant 0 : i32
    %c0_i32_1 = arith.constant 0 : i32
    return %c0_i32, %c0_i32_0 : i32, i32
  }
  func.func @transform_2(%arg0: i32) -> (i32, i32) {
    %c0_i32 = arith.constant 0 : i32
    %c0_i32_0 = arith.constant 0 : i32
    %c0_i32_1 = arith.constant 0 : i32
    return %c0_i32, %c0_i32_0 : i32, i32
  }
  func.func @transform_3(%arg0: i32) -> (i32, i32) {
    %c0_i32 = arith.constant 0 : i32
    %c0_i32_0 = arith.constant 0 : i32
    %c0_i32_1 = arith.constant 0 : i32
    return %c0_i32, %c0_i32_0 : i32, i32
  }
  func.func @transform_4(%arg0: i32) -> (i32, i32) {
    %c0_i32 = arith.constant 0 : i32
    %c0_i32_0 = arith.constant 0 : i32
    return %arg0, %c0_i32 : i32, i32
  }
}

</mosaic_0001>

<bundles_post_ra>
// kernel: snn_forward.1
= control target key start
LH: loop header
LB: loop body
LE: loop exit
PB: predicated region body
PF: predicated region fallthrough
CT: control target
= control target key end

     0   :  { %9 = vsyncpa [#allocation3], 0  ;;  %s3470_s0 = inlined_call_operand.vmem [shape: f32[8,128], index: 0, kind: input, shape index: {}]   ;;  %s3471_s1 = inlined_call_operand.hbm [shape: f32[128,128], index: 1, kind: input, shape index: {}]   ;;  %s3472_s2 = inlined_call_operand.hbm [shape: f32[128,128], index: 2, kind: input, shape index: {}]   ;;  %s3473_s3 = inlined_call_operand.hbm [shape: f32[128,128], index: 3, kind: input, shape index: {}]   ;;  %s3474_s4 = inlined_call_operand.vmem [shape: f32[8,128], index: 4, kind: output, shape index: {}]  }
   0x1   :  { %10 = vsyncpa [#allocation5], 0  ;;  %s3001_s15 = smov [#allocation4]   ;;  %s3002_s17 = smov [#allocation2]  }
   0x2   :  { %s30_s16 = sshll.u32 %s3001_s15, 4  ;;  %s18_s18 = sshll.u32 %s3002_s17, 4  ;;  %s31_s16 = int_to_ptr.vmem [resolvable:$true] %s30_s16  ;;  %s3035_s18 = int_to_ptr.vmem [resolvable:$true] %s18_s18 }
   0x3   :  { %s2931_s21 = scalar_lea.hbm %s3472_s2, 2048 }
   0x4   :  { %p2932_p0 = scmp.ne.s32.totalorder %s3472_s2, %s2931_s21  ;;  %p2935_p1 = scmp.lt.u32.totalorder %s2931_s21, %s3472_s2 }
   0x6   :  { %p2937_p2 = pnand %p2935_p1, %p2932_p0 }
   0x8   :  { %2940 = shalt.err (!%p2937_p2)
}
   0x9   :  { %s2941_s26 = scalar_lea.vmem %s31_s16, 2048  ;;  %p2946_p4 = scmp.lt.s32.totalorder %s31_s16, %s31_s16 }
   0xa   :  { %p2942_p3 = scmp.ne.s32.totalorder %s31_s16, %s2941_s26  ;;  %p2947_p5 = scmp.lt.s32.totalorder %s2941_s26, %s2941_s26 }
   0xc   :  { %p2948_p6 = por %p2947_p5, %p2946_p4 }
   0xe   :  { %p2949_p7 = pnand %p2948_p6, %p2942_p3 }
  0x10   :  { %2952 = shalt.err (!%p2949_p7)
}
  0x11   :  { %s3003_s27 = smov 128   ;;  %s3004_s28 = smov 8  }
  0x12   :  { %36 = dma.hbm_to_vmem [thread:$0]  %s3472_s2, 2048, %s31_s16, [#allocation5], %s3003_s27, %s3003_s27, %s3004_s28  }
  0x13   :  { %s2953_s7 = scalar_lea.hbm %s3471_s1, 2048 }
  0x14   :  { %p2954_p8 = scmp.ne.s32.totalorder %s3471_s1, %s2953_s7  ;;  %p2957_p9 = scmp.lt.u32.totalorder %s2953_s7, %s3471_s1 }
  0x16   :  { %p2959_p10 = pnand %p2957_p9, %p2954_p8 }
  0x18   :  { %2962 = shalt.err (!%p2959_p10)
}
  0x19   :  { %s2963_s12 = scalar_lea.vmem %s3035_s18, 2048  ;;  %p2968_p12 = scmp.lt.s32.totalorder %s3035_s18, %s3035_s18 }
  0x1a   :  { %p2964_p11 = scmp.ne.s32.totalorder %s3035_s18, %s2963_s12  ;;  %p2969_p13 = scmp.lt.s32.totalorder %s2963_s12, %s2963_s12 }
  0x1c   :  { %p2970_p0 = por %p2969_p13, %p2968_p12 }
  0x1e   :  { %p2971_p1 = pnand %p2970_p0, %p2964_p11 }
  0x20   :  { %2974 = shalt.err (!%p2971_p1)
}
  0x21   :  { %24 = dma.hbm_to_vmem [thread:$0]  %s3471_s1, 2048, %s3035_s18, [#allocation3], %s3003_s27, %s3003_s27, %s3004_s28  }
  0x22   :  { %s3005_s14 = smov [#allocation6]   ;;  %s2975_s19 = scalar_lea.hbm %s3473_s3, 2048 }
  0x23   :  { %s42_s15 = sshll.u32 %s3005_s14, 4  ;;  %p2976_p2 = scmp.ne.s32.totalorder %s3473_s3, %s2975_s19  ;;  %s43_s15 = int_to_ptr.vmem [resolvable:$true] %s42_s15 }
  0x24   :  { %p2979_p3 = scmp.lt.u32.totalorder %s2975_s19, %s3473_s3 }
  0x26   :  { %p2981_p4 = pnand %p2979_p3, %p2976_p2 }
  0x28   :  { %2984 = shalt.err (!%p2981_p4)
}
  0x29   :  { %s2985_s24 = scalar_lea.vmem %s43_s15, 2048  ;;  %p2990_p6 = scmp.lt.s32.totalorder %s43_s15, %s43_s15 }
  0x2a   :  { %p2986_p5 = scmp.ne.s32.totalorder %s43_s15, %s2985_s24  ;;  %p2991_p7 = scmp.lt.s32.totalorder %s2985_s24, %s2985_s24 }
  0x2c   :  { %p2992_p8 = por %p2991_p7, %p2990_p6 }
  0x2e   :  { %p2993_p9 = pnand %p2992_p8, %p2986_p5 }
  0x30   :  { %2996 = shalt.err (!%p2993_p9)
}
  0x31   :  { %48 = dma.hbm_to_vmem [thread:$0]  %s3473_s3, 2048, %s43_s15, [#allocation5], %s3003_s27, %s3003_s27, %s3004_s28  }
  0x32   :  { %2997 = dma.done.wait [#allocation3], 2048  }
  0x33   :  { %2998 = vsyncadd [#allocation3], 4294965248 }
  0x34   :  { %2999 = dma.done.wait [#allocation5], 4096  }
  0x35   :  { %3000 = vsyncadd [#allocation5], 4294963200  ;;  %v3006_v0 = vmov 0.0|0.0   ;;  %vm3007_vm0 = vmmov 0   ;;  %v3008_v1 = vmov 0.0   ;;  %v59_v2 = vld [vmem:[#allocation2] sm:$0xff] }
  0x36   :  { %2514 = vmatprep.subr.bf16.mxu0 %v3006_v0  ;;  %1951 = vmatprep.mubr.msk.f32.mxu0 %vm3007_vm0, %v3008_v1  ;;  %v60_v3 = vld [vmem:[#allocation2 + $0x8] sm:$0xff]  ;;  %v61_v4 = vld [vmem:[#allocation2 + $0x10] sm:$0xff]  ;;  %v62_v6 = vld [vmem:[#allocation2 + $0x18] sm:$0xff]  ;;  %v3009_v53 = vmov 1.0  }
  0x37   :  { %2538 = vmatprep.subr.bf16.mxu1 %v3006_v0  ;;  %1986 = vmatprep.mubr.msk.f32.mxu1 %vm3007_vm0, %v3008_v1  ;;  %v2515_v5 = vpack.c.bf16 %v60_v3, %v59_v2  ;;  %v2518_v7 = vpack.c.bf16 %v62_v6, %v61_v4  ;;  %v63_v8 = vld [vmem:[#allocation2 + $0x20] sm:$0xff]  ;;  %v64_v9 = vld [vmem:[#allocation2 + $0x28] sm:$0xff]  ;;  %v155_v12 = vld [vmem:[#allocation4 + $0x10] sm:$0xff] }
  0x38   :  { %v153_v10 = vld [vmem:[#allocation4] sm:$0xff]  ;;  %v154_v11 = vld [vmem:[#allocation4 + $0x8] sm:$0xff]  ;;  %v156_v13 = vld [vmem:[#allocation4 + $0x18] sm:$0xff]  ;;  %v2521_v14 = vpack.c.bf16 %v64_v9, %v63_v8 }
  0x39   :  { %2516 = vmatpush3.bf16.msra.mxu0 %v2515_v5  ;;  %v3094_v15 = vpack.c.bf16 %v154_v11, %v153_v10  ;;  %v65_v16 = vld [vmem:[#allocation2 + $0x30] sm:$0xff]  ;;  %v66_v17 = vld [vmem:[#allocation2 + $0x38] sm:$0xff]  ;;  %v3098_v18 = vpack.c.bf16 %v156_v13, %v155_v12  ;;  %v157_v19 = vld [vmem:[#allocation4 + $0x20] sm:$0xff] }
  0x3a   :  { %2517 = vmatprep.subr.bf16.mxu0 %v3006_v0  ;;  %v158_v20 = vld [vmem:[#allocation4 + $0x28] sm:$0xff]  ;;  %v2524_v21 = vpack.c.bf16 %v66_v17, %v65_v16  ;;  %v67_v22 = vld [vmem:[#allocation2 + $0x40] sm:$0xff]  ;;  %v159_v25 = vld [vmem:[#allocation4 + $0x30] sm:$0xff] }
  0x3b   :  { %2540 = vmatpush3.bf16.msra.mxu1 %v3094_v15  ;;  %v68_v23 = vld [vmem:[#allocation2 + $0x48] sm:$0xff]  ;;  %v3103_v24 = vpack.c.bf16 %v158_v20, %v157_v19  ;;  %v160_v26 = vld [vmem:[#allocation4 + $0x38] sm:$0xff]  ;;  %v69_v28 = vld [vmem:[#allocation2 + $0x50] sm:$0xff] }
  0x3c   :  { %2541 = vmatprep.subr.bf16.mxu1 %v3006_v0  ;;  %v2527_v27 = vpack.c.bf16 %v68_v23, %v67_v22  ;;  %v70_v29 = vld [vmem:[#allocation2 + $0x58] sm:$0xff]  ;;  %v3108_v30 = vpack.c.bf16 %v160_v26, %v159_v25  ;;  %v161_v31 = vld [vmem:[#allocation4 + $0x40] sm:$0xff]  ;;  %v162_v32 = vld [vmem:[#allocation4 + $0x48] sm:$0xff] }
  0x3d   :  { %2519 = vmatpush3.bf16.msra.mxu0 %v2518_v7  ;;  %v2530_v33 = vpack.c.bf16 %v70_v29, %v69_v28  ;;  %v71_v34 = vld [vmem:[#allocation2 + $0x60] sm:$0xff]  ;;  %v72_v35 = vld [vmem:[#allocation2 + $0x68] sm:$0xff]  ;;  %v3113_v36 = vpack.c.bf16 %v162_v32, %v161_v31  ;;  %v163_v37 = vld [vmem:[#allocation4 + $0x50] sm:$0xff] }
  0x3e   :  { %2520 = vmatprep.subr.bf16.mxu0 %v3006_v0  ;;  %v164_v38 = vld [vmem:[#allocation4 + $0x58] sm:$0xff]  ;;  %v2533_v39 = vpack.c.bf16 %v72_v35, %v71_v34  ;;  %v73_v40 = vld [vmem:[#allocation2 + $0x70] sm:$0xff]  ;;  %v165_v43 = vld [vmem:[#allocation4 + $0x60] sm:$0xff] }
  0x3f   :  { %2543 = vmatpush3.bf16.msra.mxu1 %v3098_v18  ;;  %v74_v41 = vld [vmem:[#allocation2 + $0x78] sm:$0xff]  ;;  %v3118_v42 = vpack.c.bf16 %v164_v38, %v163_v37  ;;  %v166_v44 = vld [vmem:[#allocation4 + $0x68] sm:$0xff]  ;;  %v167_v47 = vld [vmem:[#allocation4 + $0x70] sm:$0xff] }
  0x40   :  { %2544 = vmatprep.subr.bf16.mxu1 %v3006_v0  ;;  %v2536_v45 = vpack.c.bf16 %v74_v41, %v73_v40  ;;  %v3123_v46 = vpack.c.bf16 %v166_v44, %v165_v43  ;;  %v168_v48 = vld [vmem:[#allocation4 + $0x78] sm:$0xff]  ;;  %v58_v49 = vld [vmem:[%s3470_s0] sm:$0xff]  ;;  %v247_v63 = vld [vmem:[#allocation6 + $0x8] sm:$0xff] }
  0x41   :  { %2522 = vmatpush3.bf16.msra.mxu0 %v2521_v14  ;;  %v3131_v50 = vpack.c.bf16 %v168_v48, %v167_v47  ;;  %v246_v62 = vld [vmem:[#allocation6] sm:$0xff]  ;;  %v248_v6 = vld [vmem:[#allocation6 + $0x10] sm:$0xff]  ;;  %v249_v7 = vld [vmem:[#allocation6 + $0x18] sm:$0xff] }
  0x42   :  { %2523 = vmatprep.subr.bf16.mxu0 %v3006_v0  ;;  %v3174_v3 = vpack.c.bf16 %v247_v63, %v246_v62  ;;  %v3180_v8 = vpack.c.bf16 %v249_v7, %v248_v6  ;;  %v250_v10 = vld [vmem:[#allocation6 + $0x20] sm:$0xff]  ;;  %v251_v11 = vld [vmem:[#allocation6 + $0x28] sm:$0xff]  ;;  %v252_v13 = vld [vmem:[#allocation6 + $0x30] sm:$0xff] }
  0x43   :  { %2546 = vmatpush3.bf16.msra.mxu1 %v3103_v24  ;;  %v3186_v12 = vpack.c.bf16 %v251_v11, %v250_v10  ;;  %v253_v14 = vld [vmem:[#allocation6 + $0x38] sm:$0xff]  ;;  %v254_v17 = vld [vmem:[#allocation6 + $0x40] sm:$0xff]  ;;  %v255_v19 = vld [vmem:[#allocation6 + $0x48] sm:$0xff] }
  0x44   :  { %2547 = vmatprep.subr.bf16.mxu1 %v3006_v0  ;;  %v3196_v16 = vpack.c.bf16 %v253_v14, %v252_v13  ;;  %v3202_v20 = vpack.c.bf16 %v255_v19, %v254_v17  ;;  %v257_v22 = vld [vmem:[#allocation6 + $0x58] sm:$0xff]  ;;  %v258_v25 = vld [vmem:[#allocation6 + $0x60] sm:$0xff]  ;;  %v259_v26 = vld [vmem:[#allocation6 + $0x68] sm:$0xff] }
  0x45   :  { %2525 = vmatpush3.bf16.msra.mxu0 %v2524_v21  ;;  %v256_v21 = vld [vmem:[#allocation6 + $0x50] sm:$0xff]  ;;  %v261_v32 = vld [vmem:[#allocation6 + $0x78] sm:$0xff] }
  0x46   :  { %2526 = vmatprep.subr.bf16.mxu0 %v3006_v0  ;;  %v3208_v23 = vpack.c.bf16 %v257_v22, %v256_v21  ;;  %v260_v31 = vld [vmem:[#allocation6 + $0x70] sm:$0xff] }
  0x47   :  { %2549 = vmatpush3.bf16.msra.mxu1 %v3108_v30 }
  0x48   :  { %2550 = vmatprep.subr.bf16.mxu1 %v3006_v0 }
  0x49   :  { %2528 = vmatpush3.bf16.msra.mxu0 %v2527_v27  ;;  %v3214_v27 = vpack.c.bf16 %v259_v26, %v258_v25 }
  0x4a   :  { %2529 = vmatprep.subr.bf16.mxu0 %v3006_v0 }
  0x4b   :  { %2552 = vmatpush3.bf16.msra.mxu1 %v3113_v36 }
  0x4c   :  { %2553 = vmatprep.subr.bf16.mxu1 %v3006_v0 }
  0x4d   :  { %2531 = vmatpush3.bf16.msra.mxu0 %v2530_v33  ;;  %v3222_v33 = vpack.c.bf16 %v261_v32, %v260_v31 }
  0x4e   :  { %2532 = vmatprep.subr.bf16.mxu0 %v3006_v0 }
  0x4f   :  { %2555 = vmatpush3.bf16.msra.mxu1 %v3118_v42 }
  0x50   :  { %2556 = vmatprep.subr.bf16.mxu1 %v3006_v0 }
  0x51   :  { %2534 = vmatpush3.bf16.msra.mxu0 %v2533_v39 }
  0x52   :  { %2535 = vmatprep.subr.bf16.mxu0 %v3006_v0 }
  0x53   :  { %2558 = vmatpush3.bf16.msra.mxu1 %v3123_v46 }
  0x54   :  { %2559 = vmatprep.subr.bf16.mxu1 %v3006_v0 }
  0x55   :  { %2537 = vmatpush3.bf16.msra.mxu0 %v2536_v45 }
  0x56   :  { %2562 = vmatprep.subr.bf16.mxu0 %v3006_v0 }
  0x57   :  { %2561 = vmatpush3.bf16.msra.mxu1 %v3131_v50 }
  0x58   :  { %1952 = vmatmul.mubr.f32.vlgmr.msra.gmra.mrb[0].mxu0 %v58_v49  ;;  %2586 = vmatprep.subr.bf16.mxu1 %v3006_v0 }
  0x59   :  { %2021 = vmatprep.mubr.msk.f32.mxu0 %vm3007_vm0, %v3008_v1  ;;  %2564 = vmatpush3.bf16.msra.mxu0 %v3174_v3 }
  0x5a   :  { %2565 = vmatprep.subr.bf16.mxu0 %v3006_v0 }
  0x5d   :  { %2567 = vmatpush3.bf16.msra.mxu0 %v3180_v8 }
  0x5e   :  { %2568 = vmatprep.subr.bf16.mxu0 %v3006_v0 }
  0x61   :  { %2570 = vmatpush3.bf16.msra.mxu0 %v3186_v12 }
  0x62   :  { %2571 = vmatprep.subr.bf16.mxu0 %v3006_v0 }
  0x65   :  { %2573 = vmatpush3.bf16.msra.mxu0 %v3196_v16 }
  0x66   :  { %2574 = vmatprep.subr.bf16.mxu0 %v3006_v0 }
  0x69   :  { %2576 = vmatpush3.bf16.msra.mxu0 %v3202_v20 }
  0x6a   :  { %2577 = vmatprep.subr.bf16.mxu0 %v3006_v0 }
  0x6d   :  { %2579 = vmatpush3.bf16.msra.mxu0 %v3208_v23 }
  0x6e   :  { %2580 = vmatprep.subr.bf16.mxu0 %v3006_v0 }
  0x71   :  { %2582 = vmatpush3.bf16.msra.mxu0 %v3214_v27 }
  0x72   :  { %2583 = vmatprep.subr.bf16.mxu0 %v3006_v0 }
  0x75   :  { %2585 = vmatpush3.bf16.msra.mxu0 %v3222_v33 }
  0x76   :  { %2610 = vmatprep.subr.bf16.mxu0 %v3006_v0 }
 0x12b   :  { %v141_v51 = vpop.f32.mrb[0].mxu0 }
 0x12c   :  { %vm147_vm1 = vcmp.gt.f32.partialorder %v141_v51, 1.0  ;;  %v1953_v52 = vpop.f32.mrb[1].mxu0 }
 0x12d   :  { %1987 = vmatmul.mubr.msk.f32.vlgmr.msra.gmra.mrb[0].mxu1 %vm147_vm1, %v3009_v53  ;;  %v1572_v54 = vsel %vm147_vm1, 1.0, %v3008_v1 }
 0x12e   :  { %2588 = vmatpush3.bf16.msra.mxu1 %v3094_v15  ;;  %2056 = vmatprep.mubr.msk.f32.mxu1 %vm3007_vm0, %v3008_v1  ;;  %vm150_vm2 = vcmp.gt.f32.partialorder %v1572_v54, 0.0 }
 0x12f   :  { %2589 = vmatprep.subr.bf16.mxu1 %v3006_v0  ;;  %v151_v55 = vsel %vm150_vm2, 0.0, %v141_v51  ;;  %v152_v56 = vsel %vm150_vm2, 2.0, %v3008_v1 }
 0x130   :  { %v340_v57 = vmul.f32 0.95122945, %v151_v55  ;;  %vm342_vm3 = vcmp.gt.f32.partialorder %v152_v56, 0.0  ;;  %v1577_v60 = vadd.f32 -1.0, %v152_v56 }
 0x132   :  { %2591 = vmatpush3.bf16.msra.mxu1 %v3098_v18  ;;  %v343_v58 = vsel %vm342_vm3, 0.0, %v340_v57  ;;  %v345_v61 = vmax.f32 %v1577_v60, 0.0 }
 0x133   :  { %2592 = vmatprep.subr.bf16.mxu1 %v3006_v0  ;;  %vm346_vm4 = vcmp.gt.f32.partialorder %v343_v58, 1.0 }
 0x134   :  { %v1578_v59 = vsel %vm346_vm4, 1.0, %v3008_v1 }
 0x135   :  { %vm349_vm5 = vcmp.gt.f32.partialorder %v1578_v59, 0.0 }
 0x136   :  { %2594 = vmatpush3.bf16.msra.mxu1 %v3103_v24  ;;  %v350_v2 = vsel %vm349_vm5, 0.0, %v343_v58  ;;  %v351_v4 = vsel %vm349_vm5, 2.0, %v345_v61 }
 0x137   :  { %2595 = vmatprep.subr.bf16.mxu1 %v3006_v0  ;;  %v517_v5 = vmul.f32 0.95122945, %v350_v2  ;;  %vm519_vm6 = vcmp.gt.f32.partialorder %v351_v4, 0.0  ;;  %v1585_v29 = vadd.f32 -1.0, %v351_v4 }
 0x139   :  { %v520_v9 = vsel %vm519_vm6, 0.0, %v517_v5  ;;  %v522_v34 = vmax.f32 %v1585_v29, 0.0 }
 0x13a   :  { %2597 = vmatpush3.bf16.msra.mxu1 %v3108_v30  ;;  %vm523_vm7 = vcmp.gt.f32.partialorder %v520_v9, 1.0 }
 0x13b   :  { %2598 = vmatprep.subr.bf16.mxu1 %v3006_v0  ;;  %v1586_v28 = vsel %vm523_vm7, 1.0, %v3008_v1 }
 0x13c   :  { %vm526_vm8 = vcmp.gt.f32.partialorder %v1586_v28, 0.0 }
 0x13d   :  { %v527_v35 = vsel %vm526_vm8, 0.0, %v520_v9  ;;  %v528_v37 = vsel %vm526_vm8, 2.0, %v522_v34 }
 0x13e   :  { %2600 = vmatpush3.bf16.msra.mxu1 %v3113_v36  ;;  %v694_v38 = vmul.f32 0.95122945, %v527_v35  ;;  %vm696_vm9 = vcmp.gt.f32.partialorder %v528_v37, 0.0  ;;  %v1593_v41 = vadd.f32 -1.0, %v528_v37 }
 0x13f   :  { %2601 = vmatprep.subr.bf16.mxu1 %v3006_v0 }
 0x140   :  { %v697_v39 = vsel %vm696_vm9, 0.0, %v694_v38  ;;  %v699_v43 = vmax.f32 %v1593_v41, 0.0 }
 0x141   :  { %vm700_vm10 = vcmp.gt.f32.partialorder %v697_v39, 1.0 }
 0x142   :  { %2603 = vmatpush3.bf16.msra.mxu1 %v3118_v42  ;;  %v1594_v40 = vsel %vm700_vm10, 1.0, %v3008_v1 }
 0x143   :  { %2604 = vmatprep.subr.bf16.mxu1 %v3006_v0  ;;  %vm703_vm11 = vcmp.gt.f32.partialorder %v1594_v40, 0.0 }
 0x144   :  { %v704_v44 = vsel %vm703_vm11, 0.0, %v697_v39  ;;  %v705_v45 = vsel %vm703_vm11, 2.0, %v699_v43 }
 0x145   :  { %v871_v47 = vmul.f32 0.95122945, %v704_v44  ;;  %vm873_vm12 = vcmp.gt.f32.partialorder %v705_v45, 0.0  ;;  %v1601_v51 = vadd.f32 -1.0, %v705_v45 }
 0x146   :  { %2606 = vmatpush3.bf16.msra.mxu1 %v3123_v46 }
 0x147   :  { %2607 = vmatprep.subr.bf16.mxu1 %v3006_v0  ;;  %v874_v48 = vsel %vm873_vm12, 0.0, %v871_v47  ;;  %v876_v52 = vmax.f32 %v1601_v51, 0.0 }
 0x148   :  { %vm877_vm13 = vcmp.gt.f32.partialorder %v874_v48, 1.0 }
 0x149   :  { %v1602_v49 = vsel %vm877_vm13, 1.0, %v3008_v1 }
 0x14a   :  { %2609 = vmatpush3.bf16.msra.mxu1 %v3131_v50  ;;  %vm880_vm14 = vcmp.gt.f32.partialorder %v1602_v49, 0.0 }
 0x14b   :  { %2634 = vmatprep.subr.bf16.mxu1 %v3006_v0  ;;  %v881_v54 = vsel %vm880_vm14, 0.0, %v874_v48  ;;  %v882_v55 = vsel %vm880_vm14, 2.0, %v876_v52 }
 0x14c   :  { %v1048_v56 = vmul.f32 0.95122945, %v881_v54  ;;  %vm1050_vm15 = vcmp.gt.f32.partialorder %v882_v55, 0.0  ;;  %v1609_v59 = vadd.f32 -1.0, %v882_v55 }
 0x14d   :  { %2057 = vmatmul.mubr.msk.f32.vlgmr.msra.gmra.mrb[2].mxu1 %vm346_vm4, %v3009_v53 }
 0x14e   :  { %2636 = vmatpush3.bf16.msra.mxu1 %v3094_v15  ;;  %2126 = vmatprep.mubr.msk.f32.mxu1 %vm3007_vm0, %v3008_v1  ;;  %v1051_v57 = vsel %vm1050_vm15, 0.0, %v1048_v56  ;;  %v1053_v60 = vmax.f32 %v1609_v59, 0.0 }
 0x14f   :  { %2637 = vmatprep.subr.bf16.mxu1 %v3006_v0  ;;  %vm1054_vm1 = vcmp.gt.f32.partialorder %v1051_v57, 1.0 }
 0x150   :  { %v1610_v58 = vsel %vm1054_vm1, 1.0, %v3008_v1 }
 0x151   :  { %vm1057_vm2 = vcmp.gt.f32.partialorder %v1610_v58, 0.0 }
 0x152   :  { %2639 = vmatpush3.bf16.msra.mxu1 %v3098_v18  ;;  %v1058_v61 = vsel %vm1057_vm2, 0.0, %v1051_v57  ;;  %v1059_v62 = vsel %vm1057_vm2, 2.0, %v1053_v60 }
 0x153   :  { %2640 = vmatprep.subr.bf16.mxu1 %v3006_v0  ;;  %v1225_v63 = vmul.f32 0.95122945, %v1058_v61  ;;  %vm1227_vm3 = vcmp.gt.f32.partialorder %v1059_v62, 0.0 }
 0x155   :  { %v1228_v2 = vsel %vm1227_vm3, 0.0, %v1225_v63 }
 0x156   :  { %2642 = vmatpush3.bf16.msra.mxu1 %v3103_v24  ;;  %vm1231_vm4 = vcmp.gt.f32.partialorder %v1228_v2, 1.0 }
 0x157   :  { %2643 = vmatprep.subr.bf16.mxu1 %v3006_v0  ;;  %v1618_v4 = vsel %vm1231_vm4, 1.0, %v3008_v1 }
 0x158   :  { %vm1234_vm5 = vcmp.gt.f32.partialorder %v1618_v4, 0.0 }
 0x159   :  { %v1235_v7 = vsel %vm1234_vm5, 0.0, %v1228_v2 }
 0x15a   :  { %2645 = vmatpush3.bf16.msra.mxu1 %v3108_v30 }
 0x15b   :  { %2646 = vmatprep.subr.bf16.mxu1 %v3006_v0 }
 0x15e   :  { %2648 = vmatpush3.bf16.msra.mxu1 %v3113_v36 }
 0x15f   :  { %2649 = vmatprep.subr.bf16.mxu1 %v3006_v0 }
 0x162   :  { %2651 = vmatpush3.bf16.msra.mxu1 %v3118_v42 }
 0x163   :  { %2652 = vmatprep.subr.bf16.mxu1 %v3006_v0 }
 0x166   :  { %2654 = vmatpush3.bf16.msra.mxu1 %v3123_v46 }
 0x167   :  { %2655 = vmatprep.subr.bf16.mxu1 %v3006_v0 }
 0x16a   :  { %2657 = vmatpush3.bf16.msra.mxu1 %v3131_v50 }
 0x16b   :  { %2682 = vmatprep.subr.bf16.mxu1 %v3006_v0 }
 0x16d   :  { %2127 = vmatmul.mubr.msk.f32.vlgmr.msra.gmra.mrb[4].mxu1 %vm523_vm7, %v3009_v53 }
 0x16e   :  { %2684 = vmatpush3.bf16.msra.mxu1 %v3094_v15  ;;  %2196 = vmatprep.mubr.msk.f32.mxu1 %vm3007_vm0, %v3008_v1 }
 0x16f   :  { %2685 = vmatprep.subr.bf16.mxu1 %v3006_v0 }
 0x172   :  { %2687 = vmatpush3.bf16.msra.mxu1 %v3098_v18 }
 0x173   :  { %2688 = vmatprep.subr.bf16.mxu1 %v3006_v0 }
 0x176   :  { %2690 = vmatpush3.bf16.msra.mxu1 %v3103_v24 }
 0x177   :  { %2691 = vmatprep.subr.bf16.mxu1 %v3006_v0 }
 0x17a   :  { %2693 = vmatpush3.bf16.msra.mxu1 %v3108_v30 }
 0x17b   :  { %2694 = vmatprep.subr.bf16.mxu1 %v3006_v0 }
 0x17e   :  { %2696 = vmatpush3.bf16.msra.mxu1 %v3113_v36 }
 0x17f   :  { %2697 = vmatprep.subr.bf16.mxu1 %v3006_v0 }
 0x182   :  { %2699 = vmatpush3.bf16.msra.mxu1 %v3118_v42 }
 0x183   :  { %2700 = vmatprep.subr.bf16.mxu1 %v3006_v0 }
 0x186   :  { %2702 = vmatpush3.bf16.msra.mxu1 %v3123_v46 }
 0x187   :  { %2703 = vmatprep.subr.bf16.mxu1 %v3006_v0 }
 0x18a   :  { %2705 = vmatpush3.bf16.msra.mxu1 %v3131_v50 }
 0x18b   :  { %2730 = vmatprep.subr.bf16.mxu1 %v3006_v0 }
 0x18d   :  { %2197 = vmatmul.mubr.msk.f32.vlgmr.msra.gmra.mrb[6].mxu1 %vm700_vm10, %v3009_v53 }
 0x18e   :  { %2732 = vmatpush3.bf16.msra.mxu1 %v3094_v15  ;;  %2266 = vmatprep.mubr.msk.f32.mxu1 %vm3007_vm0, %v3008_v1 }
 0x18f   :  { %2733 = vmatprep.subr.bf16.mxu1 %v3006_v0 }
 0x192   :  { %2735 = vmatpush3.bf16.msra.mxu1 %v3098_v18 }
 0x193   :  { %2736 = vmatprep.subr.bf16.mxu1 %v3006_v0 }
 0x196   :  { %2738 = vmatpush3.bf16.msra.mxu1 %v3103_v24 }
 0x197   :  { %2739 = vmatprep.subr.bf16.mxu1 %v3006_v0 }
 0x19a   :  { %2741 = vmatpush3.bf16.msra.mxu1 %v3108_v30 }
 0x19b   :  { %2742 = vmatprep.subr.bf16.mxu1 %v3006_v0 }
 0x19e   :  { %2744 = vmatpush3.bf16.msra.mxu1 %v3113_v36 }
 0x19f   :  { %2745 = vmatprep.subr.bf16.mxu1 %v3006_v0 }
 0x1a2   :  { %2747 = vmatpush3.bf16.msra.mxu1 %v3118_v42 }
 0x1a3   :  { %2748 = vmatprep.subr.bf16.mxu1 %v3006_v0 }
 0x1a6   :  { %2750 = vmatpush3.bf16.msra.mxu1 %v3123_v46 }
 0x1a7   :  { %2751 = vmatprep.subr.bf16.mxu1 %v3006_v0 }
 0x1aa   :  { %2753 = vmatpush3.bf16.msra.mxu1 %v3131_v50 }
 0x1ab   :  { %2778 = vmatprep.subr.bf16.mxu1 %v3006_v0 }
 0x1ad   :  { %2267 = vmatmul.mubr.msk.f32.vlgmr.msra.gmra.mrb[8].mxu1 %vm877_vm13, %v3009_v53 }
 0x1ae   :  { %2780 = vmatpush3.bf16.msra.mxu1 %v3094_v15  ;;  %2336 = vmatprep.mubr.msk.f32.mxu1 %vm3007_vm0, %v3008_v1 }
 0x1af   :  { %2781 = vmatprep.subr.bf16.mxu1 %v3006_v0 }
 0x1b2   :  { %2783 = vmatpush3.bf16.msra.mxu1 %v3098_v18 }
 0x1b3   :  { %2784 = vmatprep.subr.bf16.mxu1 %v3006_v0 }
 0x1b6   :  { %2786 = vmatpush3.bf16.msra.mxu1 %v3103_v24 }
 0x1b7   :  { %2787 = vmatprep.subr.bf16.mxu1 %v3006_v0 }
 0x1ba   :  { %2789 = vmatpush3.bf16.msra.mxu1 %v3108_v30 }
 0x1bb   :  { %2790 = vmatprep.subr.bf16.mxu1 %v3006_v0 }
 0x1be   :  { %2792 = vmatpush3.bf16.msra.mxu1 %v3113_v36 }
 0x1bf   :  { %2793 = vmatprep.subr.bf16.mxu1 %v3006_v0 }
 0x1c2   :  { %2795 = vmatpush3.bf16.msra.mxu1 %v3118_v42 }
 0x1c3   :  { %2796 = vmatprep.subr.bf16.mxu1 %v3006_v0 }
 0x1c6   :  { %2798 = vmatpush3.bf16.msra.mxu1 %v3123_v46 }
 0x1c7   :  { %2799 = vmatprep.subr.bf16.mxu1 %v3006_v0 }
 0x1ca   :  { %2801 = vmatpush3.bf16.msra.mxu1 %v3131_v50 }
 0x1cb   :  { %2826 = vmatprep.subr.bf16.mxu1 %v3006_v0 }
 0x1cd   :  { %2337 = vmatmul.mubr.msk.f32.vlgmr.msra.gmra.mrb[10].mxu1 %vm1054_vm1, %v3009_v53 }
 0x1ce   :  { %2828 = vmatpush3.bf16.msra.mxu1 %v3094_v15  ;;  %2406 = vmatprep.mubr.msk.f32.mxu1 %vm3007_vm0, %v3008_v1 }
 0x1cf   :  { %2829 = vmatprep.subr.bf16.mxu1 %v3006_v0 }
 0x1d2   :  { %2831 = vmatpush3.bf16.msra.mxu1 %v3098_v18 }
 0x1d3   :  { %2832 = vmatprep.subr.bf16.mxu1 %v3006_v0 }
 0x1d6   :  { %2834 = vmatpush3.bf16.msra.mxu1 %v3103_v24 }
 0x1d7   :  { %2835 = vmatprep.subr.bf16.mxu1 %v3006_v0 }
 0x1da   :  { %2837 = vmatpush3.bf16.msra.mxu1 %v3108_v30 }
 0x1db   :  { %2838 = vmatprep.subr.bf16.mxu1 %v3006_v0 }
 0x1de   :  { %2840 = vmatpush3.bf16.msra.mxu1 %v3113_v36 }
 0x1df   :  { %2841 = vmatprep.subr.bf16.mxu1 %v3006_v0 }
 0x1e2   :  { %2843 = vmatpush3.bf16.msra.mxu1 %v3118_v42 }
 0x1e3   :  { %2844 = vmatprep.subr.bf16.mxu1 %v3006_v0 }
 0x1e6   :  { %2846 = vmatpush3.bf16.msra.mxu1 %v3123_v46 }
 0x1e7   :  { %2847 = vmatprep.subr.bf16.mxu1 %v3006_v0 }
 0x1ea   :  { %2849 = vmatpush3.bf16.msra.mxu1 %v3131_v50 }
 0x1eb   :  { %2874 = vmatprep.subr.bf16.mxu1 %v3006_v0 }
 0x1ed   :  { %2407 = vmatmul.mubr.msk.f32.vlgmr.msra.gmra.mrb[12].mxu1 %vm1231_vm4, %v3009_v53 }
 0x1ee   :  { %2876 = vmatpush3.bf16.msra.mxu1 %v3094_v15  ;;  %2476 = vmatprep.mubr.msk.f32.mxu1 %vm3007_vm0, %v3008_v1  ;;  %v1617_v15 = vadd.f32 -1.0, %v1059_v62 }
 0x1ef   :  { %2877 = vmatprep.subr.bf16.mxu1 %v3006_v0 }
 0x1f0   :  { %v1230_v6 = vmax.f32 %v1617_v15, 0.0 }
 0x1f2   :  { %2879 = vmatpush3.bf16.msra.mxu1 %v3098_v18 }
 0x1f3   :  { %2880 = vmatprep.subr.bf16.mxu1 %v3006_v0 }
 0x1f6   :  { %2882 = vmatpush3.bf16.msra.mxu1 %v3103_v24  ;;  %v1236_v24 = vsel %vm1234_vm5, 2.0, %v1230_v6 }
 0x1f7   :  { %2883 = vmatprep.subr.bf16.mxu1 %v3006_v0  ;;  %vm1404_vm7 = vcmp.gt.f32.partialorder %v1236_v24, 0.0 }
 0x1fa   :  { %2885 = vmatpush3.bf16.msra.mxu1 %v3108_v30  ;;  %v1402_v30 = vmul.f32 0.95122945, %v1235_v7 }
 0x1fb   :  { %2886 = vmatprep.subr.bf16.mxu1 %v3006_v0 }
 0x1fe   :  { %2888 = vmatpush3.bf16.msra.mxu1 %v3113_v36  ;;  %v1405_v36 = vsel %vm1404_vm7, 0.0, %v1402_v30 }
 0x1ff   :  { %2889 = vmatprep.subr.bf16.mxu1 %v3006_v0  ;;  %vm1406_vm8 = vcmp.gt.f32.partialorder %v1405_v36, 1.0 }
 0x200   :  { %v235_v5 = vpop.f32.mrb[0].mxu1 }
 0x201   :  { %vm240_vm6 = vcmp.gt.f32.partialorder %v235_v5, 1.0  ;;  %v1988_v18 = vpop.f32.mrb[1].mxu1 }
 0x202   :  { %2891 = vmatpush3.bf16.msra.mxu1 %v3118_v42  ;;  %2022 = vmatmul.mubr.msk.f32.vlgmr.msra.gmra.mrb[2].mxu0 %vm240_vm6, %v3009_v53  ;;  %v1574_v42 = vsel %vm240_vm6, 1.0, %v3008_v1 }
 0x203   :  { %2892 = vmatprep.subr.bf16.mxu1 %v3006_v0  ;;  %2612 = vmatpush3.bf16.msra.mxu0 %v3174_v3  ;;  %vm243_vm9 = vcmp.gt.f32.partialorder %v1574_v42, 0.0 }
 0x204   :  { %2613 = vmatprep.subr.bf16.mxu0 %v3006_v0  ;;  %2091 = vmatprep.mubr.msk.f32.mxu0 %vm3007_vm0, %v3008_v1 }
 0x206   :  { %2894 = vmatpush3.bf16.msra.mxu1 %v3123_v46  ;;  %v244_v46 = vsel %vm243_vm9, 0.0, %v235_v5 }
 0x207   :  { %2895 = vmatprep.subr.bf16.mxu1 %v3006_v0  ;;  %2615 = vmatpush3.bf16.msra.mxu0 %v3180_v8  ;;  %v422_v9 = vmul.f32 0.95122945, %v244_v46 }
 0x208   :  { %2616 = vmatprep.subr.bf16.mxu0 %v3006_v0 }
 0x20a   :  { %2897 = vmatpush3.bf16.msra.mxu1 %v3131_v50  ;;  %v245_v50 = vsel %vm243_vm9, 2.0, %v3008_v1 }
 0x20b   :  { %2618 = vmatpush3.bf16.msra.mxu0 %v3186_v12  ;;  %v1580_v11 = vadd.f32 -1.0, %v245_v50  ;;  %vm424_vm10 = vcmp.gt.f32.partialorder %v245_v50, 0.0 }
 0x20c   :  { %2619 = vmatprep.subr.bf16.mxu0 %v3006_v0 }
 0x20d   :  { %2477 = vmatmul.mubr.msk.f32.vlgmr.msra.gmra.mrb[14].mxu1 %vm1406_vm8, %v3009_v53  ;;  %v427_v19 = vmax.f32 %v1580_v11, 0.0 }
 0x20f   :  { %2621 = vmatpush3.bf16.msra.mxu0 %v3196_v16 }
 0x210   :  { %2622 = vmatprep.subr.bf16.mxu0 %v3006_v0 }
 0x213   :  { %2624 = vmatpush3.bf16.msra.mxu0 %v3202_v20 }
 0x214   :  { %2625 = vmatprep.subr.bf16.mxu0 %v3006_v0 }
 0x217   :  { %2627 = vmatpush3.bf16.msra.mxu0 %v3208_v23 }
 0x218   :  { %2628 = vmatprep.subr.bf16.mxu0 %v3006_v0 }
 0x21b   :  { %2630 = vmatpush3.bf16.msra.mxu0 %v3214_v27 }
 0x21c   :  { %2631 = vmatprep.subr.bf16.mxu0 %v3006_v0 }
 0x21f   :  { %2633 = vmatpush3.bf16.msra.mxu0 %v3222_v33 }
 0x220   :  { %v418_v10 = vpop.f32.mrb[2].mxu1  ;;  %2658 = vmatprep.subr.bf16.mxu0 %v3006_v0 }
 0x221   :  { %v423_v13 = vadd.f32 %v422_v9, %v418_v10  ;;  %v2058_v14 = vpop.f32.mrb[3].mxu1 }
 0x223   :  { %v425_v17 = vsel %vm424_vm10, 0.0, %v423_v13 }
 0x224   :  { %vm428_vm11 = vcmp.gt.f32.partialorder %v425_v17, 1.0 }
 0x225   :  { %2092 = vmatmul.mubr.msk.f32.vlgmr.msra.gmra.mrb[4].mxu0 %vm428_vm11, %v3009_v53  ;;  %v1581_v21 = vsel %vm428_vm11, 1.0, %v3008_v1 }
 0x226   :  { %2660 = vmatpush3.bf16.msra.mxu0 %v3174_v3  ;;  %vm431_vm12 = vcmp.gt.f32.partialorder %v1581_v21, 0.0  ;;  %2161 = vmatprep.mubr.msk.f32.mxu0 %vm3007_vm0, %v3008_v1 }
 0x227   :  { %2661 = vmatprep.subr.bf16.mxu0 %v3006_v0  ;;  %v433_v22 = vsel %vm431_vm12, 2.0, %v427_v19  ;;  %v432_v25 = vsel %vm431_vm12, 0.0, %v425_v17 }
 0x228   :  { %v599_v26 = vmul.f32 0.95122945, %v432_v25  ;;  %v1588_v31 = vadd.f32 -1.0, %v433_v22  ;;  %vm601_vm13 = vcmp.gt.f32.partialorder %v433_v22, 0.0 }
 0x22a   :  { %2663 = vmatpush3.bf16.msra.mxu0 %v3180_v8  ;;  %v604_v35 = vmax.f32 %v1588_v31, 0.0 }
 0x22b   :  { %2664 = vmatprep.subr.bf16.mxu0 %v3006_v0 }
 0x22e   :  { %2666 = vmatpush3.bf16.msra.mxu0 %v3186_v12 }
 0x22f   :  { %2667 = vmatprep.subr.bf16.mxu0 %v3006_v0 }
 0x232   :  { %2669 = vmatpush3.bf16.msra.mxu0 %v3196_v16 }
 0x233   :  { %2670 = vmatprep.subr.bf16.mxu0 %v3006_v0 }
 0x236   :  { %2672 = vmatpush3.bf16.msra.mxu0 %v3202_v20 }
 0x237   :  { %2673 = vmatprep.subr.bf16.mxu0 %v3006_v0 }
 0x23a   :  { %2675 = vmatpush3.bf16.msra.mxu0 %v3208_v23 }
 0x23b   :  { %2676 = vmatprep.subr.bf16.mxu0 %v3006_v0 }
 0x23e   :  { %2678 = vmatpush3.bf16.msra.mxu0 %v3214_v27 }
 0x23f   :  { %2679 = vmatprep.subr.bf16.mxu0 %v3006_v0 }
 0x240   :  { %v595_v28 = vpop.f32.mrb[4].mxu1 }
 0x241   :  { %v600_v29 = vadd.f32 %v599_v26, %v595_v28  ;;  %v2128_v32 = vpop.f32.mrb[5].mxu1 }
 0x242   :  { %2681 = vmatpush3.bf16.msra.mxu0 %v3222_v33 }
 0x243   :  { %v602_v34 = vsel %vm601_vm13, 0.0, %v600_v29  ;;  %2706 = vmatprep.subr.bf16.mxu0 %v3006_v0 }
 0x244   :  { %vm605_vm14 = vcmp.gt.f32.partialorder %v602_v34, 1.0 }
 0x245   :  { %2162 = vmatmul.mubr.msk.f32.vlgmr.msra.gmra.mrb[6].mxu0 %vm605_vm14, %v3009_v53  ;;  %v1589_v37 = vsel %vm605_vm14, 1.0, %v3008_v1 }
 0x246   :  { %2708 = vmatpush3.bf16.msra.mxu0 %v3174_v3  ;;  %vm608_vm15 = vcmp.gt.f32.partialorder %v1589_v37, 0.0  ;;  %2231 = vmatprep.mubr.msk.f32.mxu0 %vm3007_vm0, %v3008_v1 }
 0x247   :  { %2709 = vmatprep.subr.bf16.mxu0 %v3006_v0  ;;  %v610_v38 = vsel %vm608_vm15, 2.0, %v604_v35  ;;  %v609_v39 = vsel %vm608_vm15, 0.0, %v602_v34 }
 0x248   :  { %v776_v40 = vmul.f32 0.95122945, %v609_v39  ;;  %v1596_v44 = vadd.f32 -1.0, %v610_v38  ;;  %vm778_vm1 = vcmp.gt.f32.partialorder %v610_v38, 0.0 }
 0x24a   :  { %2711 = vmatpush3.bf16.msra.mxu0 %v3180_v8  ;;  %v781_v48 = vmax.f32 %v1596_v44, 0.0 }
 0x24b   :  { %2712 = vmatprep.subr.bf16.mxu0 %v3006_v0 }
 0x24e   :  { %2714 = vmatpush3.bf16.msra.mxu0 %v3186_v12 }
 0x24f   :  { %2715 = vmatprep.subr.bf16.mxu0 %v3006_v0 }
 0x252   :  { %2717 = vmatpush3.bf16.msra.mxu0 %v3196_v16 }
 0x253   :  { %2718 = vmatprep.subr.bf16.mxu0 %v3006_v0 }
 0x256   :  { %2720 = vmatpush3.bf16.msra.mxu0 %v3202_v20 }
 0x257   :  { %2721 = vmatprep.subr.bf16.mxu0 %v3006_v0 }
 0x25a   :  { %2723 = vmatpush3.bf16.msra.mxu0 %v3208_v23 }
 0x25b   :  { %2724 = vmatprep.subr.bf16.mxu0 %v3006_v0 }
 0x25e   :  { %2726 = vmatpush3.bf16.msra.mxu0 %v3214_v27 }
 0x25f   :  { %2727 = vmatprep.subr.bf16.mxu0 %v3006_v0 }
 0x260   :  { %v772_v41 = vpop.f32.mrb[6].mxu1 }
 0x261   :  { %v777_v43 = vadd.f32 %v776_v40, %v772_v41  ;;  %v2198_v45 = vpop.f32.mrb[7].mxu1 }
 0x262   :  { %2729 = vmatpush3.bf16.msra.mxu0 %v3222_v33 }
 0x263   :  { %v779_v47 = vsel %vm778_vm1, 0.0, %v777_v43  ;;  %2754 = vmatprep.subr.bf16.mxu0 %v3006_v0 }
 0x264   :  { %vm782_vm2 = vcmp.gt.f32.partialorder %v779_v47, 1.0 }
 0x265   :  { %2232 = vmatmul.mubr.msk.f32.vlgmr.msra.gmra.mrb[8].mxu0 %vm782_vm2, %v3009_v53  ;;  %v1597_v49 = vsel %vm782_vm2, 1.0, %v3008_v1 }
 0x266   :  { %2756 = vmatpush3.bf16.msra.mxu0 %v3174_v3  ;;  %vm785_vm3 = vcmp.gt.f32.partialorder %v1597_v49, 0.0  ;;  %2301 = vmatprep.mubr.msk.f32.mxu0 %vm3007_vm0, %v3008_v1 }
 0x267   :  { %2757 = vmatprep.subr.bf16.mxu0 %v3006_v0  ;;  %v787_v51 = vsel %vm785_vm3, 2.0, %v781_v48  ;;  %v786_v52 = vsel %vm785_vm3, 0.0, %v779_v47 }
 0x268   :  { %v953_v54 = vmul.f32 0.95122945, %v786_v52  ;;  %v1604_v57 = vadd.f32 -1.0, %v787_v51  ;;  %vm955_vm4 = vcmp.gt.f32.partialorder %v787_v51, 0.0 }
 0x26a   :  { %2759 = vmatpush3.bf16.msra.mxu0 %v3180_v8  ;;  %v958_v60 = vmax.f32 %v1604_v57, 0.0 }
 0x26b   :  { %2760 = vmatprep.subr.bf16.mxu0 %v3006_v0 }
 0x26e   :  { %2762 = vmatpush3.bf16.msra.mxu0 %v3186_v12 }
 0x26f   :  { %2763 = vmatprep.subr.bf16.mxu0 %v3006_v0 }
 0x272   :  { %2765 = vmatpush3.bf16.msra.mxu0 %v3196_v16 }
 0x273   :  { %2766 = vmatprep.subr.bf16.mxu0 %v3006_v0 }
 0x276   :  { %2768 = vmatpush3.bf16.msra.mxu0 %v3202_v20 }
 0x277   :  { %2769 = vmatprep.subr.bf16.mxu0 %v3006_v0 }
 0x27a   :  { %2771 = vmatpush3.bf16.msra.mxu0 %v3208_v23 }
 0x27b   :  { %2772 = vmatprep.subr.bf16.mxu0 %v3006_v0 }
 0x27e   :  { %2774 = vmatpush3.bf16.msra.mxu0 %v3214_v27 }
 0x27f   :  { %2775 = vmatprep.subr.bf16.mxu0 %v3006_v0 }
 0x280   :  { %v949_v55 = vpop.f32.mrb[8].mxu1 }
 0x281   :  { %v954_v56 = vadd.f32 %v953_v54, %v949_v55  ;;  %v2268_v58 = vpop.f32.mrb[9].mxu1 }
 0x282   :  { %2777 = vmatpush3.bf16.msra.mxu0 %v3222_v33 }
 0x283   :  { %v956_v59 = vsel %vm955_vm4, 0.0, %v954_v56  ;;  %2802 = vmatprep.subr.bf16.mxu0 %v3006_v0 }
 0x284   :  { %vm959_vm5 = vcmp.gt.f32.partialorder %v956_v59, 1.0 }
 0x285   :  { %2302 = vmatmul.mubr.msk.f32.vlgmr.msra.gmra.mrb[10].mxu0 %vm959_vm5, %v3009_v53  ;;  %v1605_v61 = vsel %vm959_vm5, 1.0, %v3008_v1 }
 0x286   :  { %2804 = vmatpush3.bf16.msra.mxu0 %v3174_v3  ;;  %vm962_vm6 = vcmp.gt.f32.partialorder %v1605_v61, 0.0  ;;  %2371 = vmatprep.mubr.msk.f32.mxu0 %vm3007_vm0, %v3008_v1 }
 0x287   :  { %2805 = vmatprep.subr.bf16.mxu0 %v3006_v0  ;;  %v964_v62 = vsel %vm962_vm6, 2.0, %v958_v60  ;;  %v963_v63 = vsel %vm962_vm6, 0.0, %v956_v59 }
 0x288   :  { %v1130_v2 = vmul.f32 0.95122945, %v963_v63  ;;  %v1612_v5 = vadd.f32 -1.0, %v964_v62  ;;  %vm1132_vm7 = vcmp.gt.f32.partialorder %v964_v62, 0.0 }
 0x28a   :  { %2807 = vmatpush3.bf16.msra.mxu0 %v3180_v8  ;;  %v1135_v7 = vmax.f32 %v1612_v5, 0.0 }
 0x28b   :  { %2808 = vmatprep.subr.bf16.mxu0 %v3006_v0 }
 0x28e   :  { %2810 = vmatpush3.bf16.msra.mxu0 %v3186_v12 }
 0x28f   :  { %2811 = vmatprep.subr.bf16.mxu0 %v3006_v0 }
 0x292   :  { %2813 = vmatpush3.bf16.msra.mxu0 %v3196_v16 }
 0x293   :  { %2814 = vmatprep.subr.bf16.mxu0 %v3006_v0 }
 0x296   :  { %2816 = vmatpush3.bf16.msra.mxu0 %v3202_v20 }
 0x297   :  { %2817 = vmatprep.subr.bf16.mxu0 %v3006_v0 }
 0x29a   :  { %2819 = vmatpush3.bf16.msra.mxu0 %v3208_v23 }
 0x29b   :  { %2820 = vmatprep.subr.bf16.mxu0 %v3006_v0 }
 0x29e   :  { %2822 = vmatpush3.bf16.msra.mxu0 %v3214_v27 }
 0x29f   :  { %2823 = vmatprep.subr.bf16.mxu0 %v3006_v0 }
 0x2a0   :  { %v1126_v4 = vpop.f32.mrb[10].mxu1 }
 0x2a1   :  { %v1131_v15 = vadd.f32 %v1130_v2, %v1126_v4  ;;  %v2338_v18 = vpop.f32.mrb[11].mxu1 }
 0x2a2   :  { %2825 = vmatpush3.bf16.msra.mxu0 %v3222_v33 }
 0x2a3   :  { %v1133_v6 = vsel %vm1132_vm7, 0.0, %v1131_v15  ;;  %2850 = vmatprep.subr.bf16.mxu0 %v3006_v0 }
 0x2a4   :  { %vm1136_vm8 = vcmp.gt.f32.partialorder %v1133_v6, 1.0 }
 0x2a5   :  { %2372 = vmatmul.mubr.msk.f32.vlgmr.msra.gmra.mrb[12].mxu0 %vm1136_vm8, %v3009_v53  ;;  %v1613_v24 = vsel %vm1136_vm8, 1.0, %v3008_v1 }
 0x2a6   :  { %2852 = vmatpush3.bf16.msra.mxu0 %v3174_v3  ;;  %vm1139_vm9 = vcmp.gt.f32.partialorder %v1613_v24, 0.0  ;;  %2441 = vmatprep.mubr.msk.f32.mxu0 %vm3007_vm0, %v3008_v1 }
 0x2a7   :  { %2853 = vmatprep.subr.bf16.mxu0 %v3006_v0  ;;  %v1141_v30 = vsel %vm1139_vm9, 2.0, %v1135_v7  ;;  %v1140_v36 = vsel %vm1139_vm9, 0.0, %v1133_v6 }
 0x2a8   :  { %v1307_v42 = vmul.f32 0.95122945, %v1140_v36  ;;  %v1620_v9 = vadd.f32 -1.0, %v1141_v30  ;;  %vm1309_vm10 = vcmp.gt.f32.partialorder %v1141_v30, 0.0 }
 0x2aa   :  { %2855 = vmatpush3.bf16.msra.mxu0 %v3180_v8  ;;  %v1312_v13 = vmax.f32 %v1620_v9, 0.0 }
 0x2ab   :  { %2856 = vmatprep.subr.bf16.mxu0 %v3006_v0 }
 0x2ae   :  { %2858 = vmatpush3.bf16.msra.mxu0 %v3186_v12 }
 0x2af   :  { %2859 = vmatprep.subr.bf16.mxu0 %v3006_v0 }
 0x2b2   :  { %2861 = vmatpush3.bf16.msra.mxu0 %v3196_v16 }
 0x2b3   :  { %2862 = vmatprep.subr.bf16.mxu0 %v3006_v0 }
 0x2b6   :  { %2864 = vmatpush3.bf16.msra.mxu0 %v3202_v20 }
 0x2b7   :  { %2865 = vmatprep.subr.bf16.mxu0 %v3006_v0 }
 0x2ba   :  { %2867 = vmatpush3.bf16.msra.mxu0 %v3208_v23 }
 0x2bb   :  { %2868 = vmatprep.subr.bf16.mxu0 %v3006_v0 }
 0x2be   :  { %2870 = vmatpush3.bf16.msra.mxu0 %v3214_v27 }
 0x2bf   :  { %2871 = vmatprep.subr.bf16.mxu0 %v3006_v0 }
 0x2c0   :  { %v1303_v46 = vpop.f32.mrb[12].mxu1 }
 0x2c1   :  { %v1308_v50 = vadd.f32 %v1307_v42, %v1303_v46  ;;  %v2408_v10 = vpop.f32.mrb[13].mxu1 }
 0x2c2   :  { %2873 = vmatpush3.bf16.msra.mxu0 %v3222_v33 }
 0x2c3   :  { %v1310_v11 = vsel %vm1309_vm10, 0.0, %v1308_v50  ;;  %2898 = vmatprep.subr.bf16.mxu0 %v3006_v0 }
 0x2c4   :  { %vm1313_vm11 = vcmp.gt.f32.partialorder %v1310_v11, 1.0 }
 0x2c5   :  { %2442 = vmatmul.mubr.msk.f32.vlgmr.msra.gmra.mrb[14].mxu0 %vm1313_vm11, %v3009_v53  ;;  %v1621_v14 = vsel %vm1313_vm11, 1.0, %v3008_v1 }
 0x2c6   :  { %2900 = vmatpush3.bf16.msra.mxu0 %v3174_v3  ;;  %vm1316_vm12 = vcmp.gt.f32.partialorder %v1621_v14, 0.0  ;;  %2511 = vmatprep.mubr.msk.f32.mxu0 %vm3007_vm0, %v3008_v1 }
 0x2c7   :  { %2901 = vmatprep.subr.bf16.mxu0 %v3006_v0  ;;  %v1318_v17 = vsel %vm1316_vm12, 2.0, %v1312_v13 }
 0x2c8   :  { %vm1481_vm0 = vcmp.gt.f32.partialorder %v1318_v17, 0.0 }
 0x2ca   :  { %2903 = vmatpush3.bf16.msra.mxu0 %v3180_v8  ;;  %v1317_v8 = vsel %vm1316_vm12, 0.0, %v1310_v11 }
 0x2cb   :  { %2904 = vmatprep.subr.bf16.mxu0 %v3006_v0 }
 0x2ce   :  { %2906 = vmatpush3.bf16.msra.mxu0 %v3186_v12  ;;  %v1479_v12 = vmul.f32 0.95122945, %v1317_v8 }
 0x2cf   :  { %2907 = vmatprep.subr.bf16.mxu0 %v3006_v0 }
 0x2d2   :  { %2909 = vmatpush3.bf16.msra.mxu0 %v3196_v16 }
 0x2d3   :  { %2910 = vmatprep.subr.bf16.mxu0 %v3006_v0 }
 0x2d5   :  { %v328_v3 = vpop.f32.mrb[2].mxu0 }
 0x2d6   :  { %2912 = vmatpush3.bf16.msra.mxu0 %v3202_v20  ;;  %v2023_v19 = vpop.f32.mrb[3].mxu0  ;;  %vm333_vm14 = vcmp.gt.f32.partialorder %v328_v3, 1.0 }
 0x2d7   :  { %2913 = vmatprep.subr.bf16.mxu0 %v3006_v0 }
 0x2da   :  { %2915 = vmatpush3.bf16.msra.mxu0 %v3208_v23  ;;  %v1576_v23 = vsel %vm333_vm14, 1.0, %v3008_v1 }
 0x2db   :  { %2916 = vmatprep.subr.bf16.mxu0 %v3006_v0  ;;  %vm336_vm15 = vcmp.gt.f32.partialorder %v1576_v23, 0.0 }
 0x2dc   :  { %v337_v25 = vsel %vm336_vm15, 0.0, %v328_v3 }
 0x2dd   :  { %v504_v26 = vmul.f32 0.95122945, %v337_v25 }
 0x2de   :  { %2918 = vmatpush3.bf16.msra.mxu0 %v3214_v27  ;;  %v338_v27 = vsel %vm336_vm15, 2.0, %v3008_v1 }
 0x2df   :  { %2919 = vmatprep.subr.bf16.mxu0 %v3006_v0  ;;  %v1583_v0 = vadd.f32 -1.0, %v338_v27  ;;  %vm506_vm1 = vcmp.gt.f32.partialorder %v338_v27, 0.0 }
 0x2e0   :  { %v1475_v16 = vpop.f32.mrb[14].mxu1 }
 0x2e1   :  { %v1480_v21 = vadd.f32 %v1479_v12, %v1475_v16  ;;  %v2478_v22 = vpop.f32.mrb[15].mxu1 }
 0x2e2   :  { %2921 = vmatpush3.bf16.msra.mxu0 %v3222_v33  ;;  %v509_v33 = vmax.f32 %v1583_v0, 0.0 }
 0x2e3   :  { %v1482_v20 = vsel %vm1481_vm0, 0.0, %v1480_v21 }
 0x2e4   :  { %vm1483_vm13 = vcmp.gt.f32.partialorder %v1482_v20, 1.0 }
 0x2e5   :  { %2512 = vmatmul.mubr.msk.f32.vlgmr.msra.gmra.mrb[16].mxu0 %vm1483_vm13, %v3009_v53 }
 0x2f8   :  { %v500_v28 = vpop.f32.mrb[4].mxu0 }
 0x2f9   :  { %v505_v29 = vadd.f32 %v504_v26, %v500_v28  ;;  %v2093_v31 = vpop.f32.mrb[5].mxu0 }
 0x2fb   :  { %v507_v32 = vsel %vm506_vm1, 0.0, %v505_v29 }
 0x2fc   :  { %vm510_vm2 = vcmp.gt.f32.partialorder %v507_v32, 1.0 }
 0x2fd   :  { %v1584_v34 = vsel %vm510_vm2, 1.0, %v3008_v1 }
 0x2fe   :  { %v516_v35 = vadd.f32 %v1584_v34, %v1576_v23  ;;  %vm513_vm3 = vcmp.gt.f32.partialorder %v1584_v34, 0.0 }
 0x2ff   :  { %v515_v53 = vsel %vm513_vm3, 2.0, %v509_v33  ;;  %v514_v37 = vsel %vm513_vm3, 0.0, %v507_v32 }
 0x300   :  { %v681_v38 = vmul.f32 0.95122945, %v514_v37  ;;  %v1591_v41 = vadd.f32 -1.0, %v515_v53  ;;  %vm683_vm4 = vcmp.gt.f32.partialorder %v515_v53, 0.0 }
 0x302   :  { %v686_v45 = vmax.f32 %v1591_v41, 0.0 }
 0x318   :  { %v677_v39 = vpop.f32.mrb[6].mxu0 }
 0x319   :  { %v682_v40 = vadd.f32 %v681_v38, %v677_v39  ;;  %v2163_v43 = vpop.f32.mrb[7].mxu0 }
 0x31b   :  { %v684_v44 = vsel %vm683_vm4, 0.0, %v682_v40 }
 0x31c   :  { %vm687_vm5 = vcmp.gt.f32.partialorder %v684_v44, 1.0 }
 0x31d   :  { %v1592_v47 = vsel %vm687_vm5, 1.0, %v3008_v1 }
 0x31e   :  { %v693_v48 = vadd.f32 %v1592_v47, %v516_v35  ;;  %vm690_vm6 = vcmp.gt.f32.partialorder %v1592_v47, 0.0 }
 0x31f   :  { %v692_v49 = vsel %vm690_vm6, 2.0, %v686_v45  ;;  %v691_v51 = vsel %vm690_vm6, 0.0, %v684_v44 }
 0x320   :  { %v858_v52 = vmul.f32 0.95122945, %v691_v51  ;;  %v1599_v56 = vadd.f32 -1.0, %v692_v49  ;;  %vm860_vm7 = vcmp.gt.f32.partialorder %v692_v49, 0.0 }
 0x322   :  { %v863_v59 = vmax.f32 %v1599_v56, 0.0 }
 0x338   :  { %v854_v54 = vpop.f32.mrb[8].mxu0 }
 0x339   :  { %v859_v55 = vadd.f32 %v858_v52, %v854_v54  ;;  %v2233_v57 = vpop.f32.mrb[9].mxu0 }
 0x33b   :  { %v861_v58 = vsel %vm860_vm7, 0.0, %v859_v55 }
 0x33c   :  { %vm864_vm8 = vcmp.gt.f32.partialorder %v861_v58, 1.0 }
 0x33d   :  { %v1600_v60 = vsel %vm864_vm8, 1.0, %v3008_v1 }
 0x33e   :  { %v870_v61 = vadd.f32 %v1600_v60, %v693_v48  ;;  %vm867_vm9 = vcmp.gt.f32.partialorder %v1600_v60, 0.0 }
 0x33f   :  { %v869_v62 = vsel %vm867_vm9, 2.0, %v863_v59  ;;  %v868_v63 = vsel %vm867_vm9, 0.0, %v861_v58 }
 0x340   :  { %v1035_v2 = vmul.f32 0.95122945, %v868_v63  ;;  %v1607_v5 = vadd.f32 -1.0, %v869_v62  ;;  %vm1037_vm10 = vcmp.gt.f32.partialorder %v869_v62, 0.0 }
 0x342   :  { %v1040_v7 = vmax.f32 %v1607_v5, 0.0 }
 0x358   :  { %v1031_v4 = vpop.f32.mrb[10].mxu0 }
 0x359   :  { %v1036_v15 = vadd.f32 %v1035_v2, %v1031_v4  ;;  %v2303_v18 = vpop.f32.mrb[11].mxu0 }
 0x35b   :  { %v1038_v6 = vsel %vm1037_vm10, 0.0, %v1036_v15 }
 0x35c   :  { %vm1041_vm11 = vcmp.gt.f32.partialorder %v1038_v6, 1.0 }
 0x35d   :  { %v1608_v24 = vsel %vm1041_vm11, 1.0, %v3008_v1 }
 0x35e   :  { %v1047_v30 = vadd.f32 %v1608_v24, %v870_v61  ;;  %vm1044_vm12 = vcmp.gt.f32.partialorder %v1608_v24, 0.0 }
 0x35f   :  { %v1046_v36 = vsel %vm1044_vm12, 2.0, %v1040_v7  ;;  %v1045_v42 = vsel %vm1044_vm12, 0.0, %v1038_v6 }
 0x360   :  { %v1212_v46 = vmul.f32 0.95122945, %v1045_v42  ;;  %v1615_v10 = vadd.f32 -1.0, %v1046_v36  ;;  %vm1214_vm0 = vcmp.gt.f32.partialorder %v1046_v36, 0.0 }
 0x362   :  { %v1217_v14 = vmax.f32 %v1615_v10, 0.0 }
 0x378   :  { %v1208_v50 = vpop.f32.mrb[12].mxu0 }
 0x379   :  { %v1213_v9 = vadd.f32 %v1212_v46, %v1208_v50  ;;  %v2373_v11 = vpop.f32.mrb[13].mxu0 }
 0x37b   :  { %v1215_v13 = vsel %vm1214_vm0, 0.0, %v1213_v9 }
 0x37c   :  { %vm1218_vm13 = vcmp.gt.f32.partialorder %v1215_v13, 1.0 }
 0x37d   :  { %v1616_v17 = vsel %vm1218_vm13, 1.0, %v3008_v1 }
 0x37e   :  { %v1224_v3 = vadd.f32 %v1616_v17, %v1047_v30  ;;  %vm1221_vm14 = vcmp.gt.f32.partialorder %v1616_v17, 0.0 }
 0x37f   :  { %v1223_v19 = vsel %vm1221_vm14, 2.0, %v1217_v14  ;;  %v1222_v8 = vsel %vm1221_vm14, 0.0, %v1215_v13 }
 0x380   :  { %v1389_v12 = vmul.f32 0.95122945, %v1222_v8  ;;  %v1623_v22 = vadd.f32 -1.0, %v1223_v19  ;;  %vm1391_vm15 = vcmp.gt.f32.partialorder %v1223_v19, 0.0 }
 0x382   :  { %v1394_v27 = vmax.f32 %v1623_v22, 0.0 }
 0x398   :  { %v1385_v16 = vpop.f32.mrb[14].mxu0 }
 0x399   :  { %v1390_v21 = vadd.f32 %v1389_v12, %v1385_v16  ;;  %v2443_v20 = vpop.f32.mrb[15].mxu0 }
 0x39b   :  { %v1392_v23 = vsel %vm1391_vm15, 0.0, %v1390_v21 }
 0x39c   :  { %vm1395_vm1 = vcmp.gt.f32.partialorder %v1392_v23, 1.0 }
 0x39d   :  { %v1624_v25 = vsel %vm1395_vm1, 1.0, %v3008_v1 }
 0x39e   :  { %v1401_v26 = vadd.f32 %v1624_v25, %v1224_v3  ;;  %vm1398_vm2 = vcmp.gt.f32.partialorder %v1624_v25, 0.0 }
 0x39f   :  { %v1400_v28 = vsel %vm1398_vm2, 2.0, %v1394_v27  ;;  %v1399_v0 = vsel %vm1398_vm2, 0.0, %v1392_v23 }
 0x3a0   :  { %v1556_v29 = vmul.f32 0.95122945, %v1399_v0  ;;  %vm1558_vm3 = vcmp.gt.f32.partialorder %v1400_v28, 0.0 }
 0x3b8   :  { %v1552_v31 = vpop.f32.mrb[16].mxu0 }
 0x3b9   :  { %v1557_v32 = vadd.f32 %v1556_v29, %v1552_v31  ;;  %v2513_v33 = vpop.f32.mrb[17].mxu0 }
 0x3bb   :  { %v1559_v34 = vsel %vm1558_vm3, 0.0, %v1557_v32 }
 0x3bc   :  { %vm1560_vm4 = vcmp.gt.f32.partialorder %v1559_v34, 1.0 }
 0x3bd   :  { %v1629_v35 = vsel %vm1560_vm4, 1.0, %v3008_v1 }
 0x3be   :  { %v1563_v53 = vadd.f32 %v1629_v35, %v1401_v26 }
 0x3c0   :  { %v1564_v37 = vmul.f32 0.125, %v1563_v53 }
 0x3c2   :  { %1565 = vst [vmem:[%s3474_s4] sm:$0xff] %v1564_v37 }
 0x3c3   :  { %1570 = vsyncpa [#allocation3], 1 }
 0x3c4   :  { %1571 = vsyncpa [#allocation5], 1 }

</bundles_post_ra>
